<compile_context>
chip_gen: v7x
topology: tpu7x:2x2x1
jax: 0.10.0
libtpu: 0.0.40
codegen_flags: <defaults>
</compile_context>

<pallas_src>
import numpy as np
import jax
import jax.numpy as jnp
from jax.experimental import pallas as pl
from jax.experimental.pallas import tpu as pltpu

LN_EPS = 1e-5  # torch.nn.LayerNorm default


def _round_up(x, m):
    return (x + m - 1) // m * m


def _tpu_config():
    """Per-generation defaults. Conservative fallback if the query fails."""
    vmem_cap = None
    try:
        info = pltpu.get_tpu_info()
        vmem_cap = int(getattr(info, "vmem_capacity_bytes", 0)) or None
    except Exception:
        vmem_cap = None
    if vmem_cap is None:
        # Unknown chip: stay under every generation's default scoped limit.
        return dict(vmem_limit=32 * 1024 * 1024, tile_max=256, min_grid_steps=1)
    if vmem_cap <= 64 * 1024 * 1024:
        # v7x-like: 64 MiB VMEM, 2 TensorCores -> headroom + keep >=2 grid steps.
        return dict(vmem_limit=48 * 1024 * 1024, tile_max=256, min_grid_steps=2)
    # v5e / v6e: 128 MiB VMEM, single TensorCore -> big tiles, one step is fine.
    return dict(vmem_limit=100 * 1024 * 1024, tile_max=512, min_grid_steps=1)


_CFG = _tpu_config()


def _choose_row_tile(m):
    """Row tile (sublane dim) for f32 input slabs; multiple of 8."""
    tile = _round_up(max(m, 8), 8)
    if _CFG["min_grid_steps"] > 1 and m > 8:
        # Only split when there are multiple TensorCores worth feeding (v7x).
        tile = _round_up(-(-m // _CFG["min_grid_steps"]), 8)
    return max(8, min(_CFG["tile_max"], tile))


# ----------------------------------------------------------------------------
# Fused MLPNet (Linear no-bias -> SiLU -> Linear no-bias) + LayerNorm + residual
# ----------------------------------------------------------------------------
def _make_mlp_ln_kernel(n_in):
    """refs: x_0..x_{n-1} (f32), w1 (bf16, stacked), w2 (bf16), gamma, beta,
    residual (f32), out (f32). Matmuls run bf16 on the MXU with f32
    accumulation; LayerNorm and the residual add stay f32."""

    def kernel(*refs):
        xs = refs[:n_in]
        w1_ref, w2_ref, g_ref, b_ref, r_ref, o_ref = refs[n_in:]

        # Cast inputs to bf16 in-kernel and lane-concatenate -> ONE MXU dot.
        if n_in == 1:
            x_cat = xs[0][...].astype(jnp.bfloat16)
        else:
            x_cat = jnp.concatenate(
                [x[...].astype(jnp.bfloat16) for x in xs], axis=-1)

        h = jnp.dot(x_cat, w1_ref[...], preferred_element_type=jnp.float32)
        h = h * jax.nn.sigmoid(h)                         # SiLU (f32, EUP)

        y = jnp.dot(h.astype(jnp.bfloat16), w2_ref[...],
                    preferred_element_type=jnp.float32)

        # LayerNorm over the real channel width (no lane padding -> no mask).
        mean = jnp.mean(y, axis=-1, keepdims=True)
        diff = y - mean
        var = jnp.mean(diff * diff, axis=-1, keepdims=True)
        yn = diff * jax.lax.rsqrt(var + LN_EPS)

        # Fused residual add; store at the real channel width.
        # TODO(synk): optionally repack 4 rows into one 128-lane row for fully
        # unmasked vst at very large M.
        o_ref[...] = yn * g_ref[...] + b_ref[...] + r_ref[...]

    return kernel


def fused_mlp_ln(xs, residual, w1, w2, gamma, beta):
    """Apply MLPNet(+LayerNorm) to concat(xs, -1) and add `residual`, without
    ever materializing the concat in HBM. xs: list of (M, cin_i) f32 slabs;
    w1: (sum cin_i, latent); residual: (M, cout). Returns (M, cout) f32."""
    M = xs[0].shape[0]
    cout = w2.shape[1]
    tm = _choose_row_tile(M)
    mp = _round_up(M, tm)

    if mp != M:
        xs = [jnp.pad(x, ((0, mp - M), (0, 0))) for x in xs]
        residual = jnp.pad(residual, ((0, mp - M), (0, 0)))

    w1_b = w1.astype(jnp.bfloat16)
    w2_b = w2.astype(jnp.bfloat16)
    g = gamma.reshape(1, cout).astype(jnp.float32)
    b = beta.reshape(1, cout).astype(jnp.float32)

    # TODO(synk): constant-index weight blocks could use
    # pipeline_mode=pl.Buffered(1); negligible at these channel widths.
    in_specs = (
        [pl.BlockSpec((tm, x.shape[1]), lambda i: (i, 0)) for x in xs]
        + [pl.BlockSpec(w1_b.shape, lambda i: (0, 0)),
           pl.BlockSpec(w2_b.shape, lambda i: (0, 0)),
           pl.BlockSpec((1, cout), lambda i: (0, 0)),
           pl.BlockSpec((1, cout), lambda i: (0, 0)),
           pl.BlockSpec((tm, cout), lambda i: (i, 0))]
    )

    out = pl.pallas_call(
        _make_mlp_ln_kernel(len(xs)),
        out_shape=jax.ShapeDtypeStruct((mp, cout), jnp.float32),
        grid=(mp // tm,),
        in_specs=in_specs,
        out_specs=pl.BlockSpec((tm, cout), lambda i: (i, 0)),
        compiler_params=pltpu.CompilerParams(
            dimension_semantics=("parallel",),
            vmem_limit_bytes=_CFG["vmem_limit"]),
    )(*xs, w1_b, w2_b, g, b, residual)

    return out if mp == M else out[:M]


# ----------------------------------------------------------------------------
# scatter(edge_feats, dst_idx, dim=1, reduce='sum'), zero-padded to n_nodes.
# One-hot built in-kernel from dst_idx; contraction stays in the natural
# (B, E, C) layout and in f32 (matches the torch reference exactly).
# ----------------------------------------------------------------------------
def _make_scatter_kernel(n_nodes, n_edges):
    def kernel(d_ref, e_ref, o_ref):
        rows = jax.lax.broadcasted_iota(jnp.int32, (n_nodes, n_edges), 0)
        onehot = (rows == d_ref[...]).astype(jnp.float32)        # (Nm, E)
        o_ref[0] = jnp.dot(onehot, e_ref[0],
                           preferred_element_type=jnp.float32)   # (Nm, C)
    return kernel


def scatter_sum(dst_idx, edge_feats, n_nodes):
    """edge_feats (B, E, C) f32, dst_idx (E,) int -> (B, n_nodes, C) f32."""
    B, E, C = edge_feats.shape
    dst2d = dst_idx.reshape(1, E).astype(jnp.int32)

    # TODO(synk): for very large Nm / E, tile the node axis and make E a
    # trailing "arbitrary" reduction axis with an f32 VMEM accumulator so the
    # per-step footprint stays under v7x's 64 MiB VMEM.
    return pl.pallas_call(
        _make_scatter_kernel(n_nodes, E),
        out_shape=jax.ShapeDtypeStruct((B, n_nodes, C), jnp.float32),
        grid=(B,),
        in_specs=[pl.BlockSpec((1, E), lambda b: (0, 0)),
                  pl.BlockSpec((1, E, C), lambda b: (b, 0, 0))],
        out_specs=pl.BlockSpec((1, n_nodes, C), lambda b: (b, 0, 0)),
        compiler_params=pltpu.CompilerParams(
            dimension_semantics=("parallel",),
            vmem_limit_bytes=_CFG["vmem_limit"]),
    )(dst2d, edge_feats)


# ----------------------------------------------------------------------------
# Parameters (deterministic synthetic init matching the module's shapes)
# ----------------------------------------------------------------------------
def _mlp_params(key, cin, cout, latent):
    k1, k2 = jax.random.split(key)
    return dict(
        w1=jax.random.normal(k1, (cin, latent), jnp.float32) / np.sqrt(cin),
        w2=jax.random.normal(k2, (latent, cout), jnp.float32) / np.sqrt(latent),
        gamma=jnp.ones((cout,), jnp.float32),   # torch LayerNorm default weight
        beta=jnp.zeros((cout,), jnp.float32),   # torch LayerNorm default bias
    )


def init_g2m_params(key, node_ch, edge_ch, latent):
    k1, k2, k3 = jax.random.split(key, 3)
    return dict(
        node_fn=_mlp_params(k1, node_ch + edge_ch, node_ch, latent),
        edge_fn=_mlp_params(k2, 2 * node_ch + edge_ch, edge_ch, latent),
        grid_node_mlp=_mlp_params(k3, node_ch, node_ch, latent),
    )


# ----------------------------------------------------------------------------
# G2MGnn forward (Pallas-backed)
# ----------------------------------------------------------------------------
def g2m_gnn_forward(params, grid_node, mesh_node, g2m_edge, src_idx, dst_idx):
    B, Ng, Cn = grid_node.shape
    _, Nm, _ = mesh_node.shape
    _, E, Ce = g2m_edge.shape

    # TODO(synk): for very large E, fold these row gathers into the edge kernel
    # via PrefetchScalarGridSpec + pl.Element index maps instead of XLA takes.
    src_feats = jnp.take(grid_node, src_idx, axis=1)            # (B, E, Cn)
    dst_feats = jnp.take(mesh_node, dst_idx, axis=1)            # (B, E, Cn)

    # edge_fn: MLP(concat(src, dst, edge)) + LayerNorm, residual (+ g2m_edge)
    pe = params["edge_fn"]
    g2m_edge_attr = fused_mlp_ln(
        [src_feats.reshape(B * E, Cn),
         dst_feats.reshape(B * E, Cn),
         g2m_edge.reshape(B * E, Ce)],
        g2m_edge.reshape(B * E, Ce),
        pe["w1"], pe["w2"], pe["gamma"], pe["beta"]).reshape(B, E, Ce)

    # scatter-sum of the RAW edge features onto destination nodes (f32)
    sum_edge = scatter_sum(dst_idx, g2m_edge, Nm)               # (B, Nm, Ce)

    # node_fn: MLP(concat(mesh_node, sum_edge)) + LayerNorm, residual (+ mesh)
    pn = params["node_fn"]
    mesh_node_aggr = fused_mlp_ln(
        [mesh_node.reshape(B * Nm, Cn), sum_edge.reshape(B * Nm, Ce)],
        mesh_node.reshape(B * Nm, Cn),
        pn["w1"], pn["w2"], pn["gamma"], pn["beta"]).reshape(B, Nm, Cn)

    # grid_node_mlp + residual
    pg = params["grid_node_mlp"]
    grid_node_new = fused_mlp_ln(
        [grid_node.reshape(B * Ng, Cn)],
        grid_node.reshape(B * Ng, Cn),
        pg["w1"], pg["w2"], pg["gamma"], pg["beta"]).reshape(B, Ng, Cn)

    return grid_node_new, mesh_node_aggr, g2m_edge_attr


# ----------------------------------------------------------------------------
# Pure-JAX f32 reference (sanity check only)
# ----------------------------------------------------------------------------
def _mlp_ref(x, p):
    h = x @ p["w1"]
    h = h * jax.nn.sigmoid(h)
    y = h @ p["w2"]
    mean = y.mean(-1, keepdims=True)
    var = ((y - mean) ** 2).mean(-1, keepdims=True)
    return (y - mean) / jnp.sqrt(var + LN_EPS) * p["gamma"] + p["beta"]


def g2m_gnn_ref(params, grid_node, mesh_node, g2m_edge, src_idx, dst_idx):
    B, Ng, Cn = grid_node.shape
    _, Nm, _ = mesh_node.shape
    _, E, Ce = g2m_edge.shape
    src_feats = jnp.take(grid_node, src_idx, axis=1)
    dst_feats = jnp.take(mesh_node, dst_idx, axis=1)
    upd_edge = _mlp_ref(jnp.concatenate([src_feats, dst_feats, g2m_edge], -1),
                        params["edge_fn"])
    sum_edge = jnp.zeros((B, Nm, Ce), jnp.float32).at[:, dst_idx].add(g2m_edge)
    upd_dst = _mlp_ref(jnp.concatenate([mesh_node, sum_edge], -1),
                       params["node_fn"])
    grid_new = _mlp_ref(grid_node, params["grid_node_mlp"])
    return grid_new + grid_node, upd_dst + mesh_node, upd_edge + g2m_edge


# ----------------------------------------------------------------------------
if __name__ == "__main__":
    import functools

    key = jax.random.PRNGKey(0)
    B, Ng, Nm, E = 2, 16, 12, 24
    Cn, Ce, LAT = 32, 32, 32
    ks = jax.random.split(key, 6)

    grid_node = jax.random.normal(ks[0], (B, Ng, Cn), jnp.float32)
    mesh_node = jax.random.normal(ks[1], (B, Nm, Cn), jnp.float32)
    g2m_edge = jax.random.normal(ks[2], (B, E, Ce), jnp.float32)
    src_idx = jax.random.randint(ks[3], (E,), 0, Ng, dtype=jnp.int32)
    dst_idx = jax.random.randint(ks[4], (E,), 0, Nm, dtype=jnp.int32)
    params = init_g2m_params(ks[5], Cn, Ce, LAT)

    fwd = jax.jit(functools.partial(g2m_gnn_forward, params))
    outs = jax.block_until_ready(
        fwd(grid_node, mesh_node, g2m_edge, src_idx, dst_idx))

    refs = g2m_gnn_ref(params, grid_node, mesh_node, g2m_edge, src_idx, dst_idx)
    for o, r in zip(outs, refs):
        np.testing.assert_allclose(np.asarray(o), np.asarray(r),
                                   rtol=5e-2, atol=5e-2)
    print("KERNEL_OK")
</pallas_src>

<mosaic_0001>
module attributes {stable_mosaic.version = 11 : i64} {
  func.func @kernel(%arg0: i32, %arg1: memref<48x32xf32, #tpu.memory_space<vmem>>, %arg2: memref<48x32xf32, #tpu.memory_space<vmem>>, %arg3: memref<48x32xf32, #tpu.memory_space<vmem>>, %arg4: memref<96x32xbf16, #tpu.memory_space<vmem>>, %arg5: memref<32x32xbf16, #tpu.memory_space<vmem>>, %arg6: memref<1x32xf32, #tpu.memory_space<vmem>>, %arg7: memref<1x32xf32, #tpu.memory_space<vmem>>, %arg8: memref<48x32xf32, #tpu.memory_space<vmem>>, %arg9: memref<48x32xf32, #tpu.memory_space<vmem>>) attributes {dimension_semantics = [#tpu.dimension_semantics<parallel>], iteration_bounds = array<i64: 1>, scalar_prefetch = 0 : i64, scratch_operands = 0 : i64, tpu.core_type = #tpu.core_type<tc>, window_params = [{transform_indices = @transform_0, window_bounds = array<i64: 48, 32>}, {transform_indices = @transform_1, window_bounds = array<i64: 48, 32>}, {transform_indices = @transform_2, window_bounds = array<i64: 48, 32>}, {pipeline_mode = #tpu.pipeline_mode<synchronous>, transform_indices = @transform_3, window_bounds = array<i64: 96, 32>}, {pipeline_mode = #tpu.pipeline_mode<synchronous>, transform_indices = @transform_4, window_bounds = array<i64: 32, 32>}, {pipeline_mode = #tpu.pipeline_mode<synchronous>, transform_indices = @transform_5, window_bounds = array<i64: 1, 32>}, {pipeline_mode = #tpu.pipeline_mode<synchronous>, transform_indices = @transform_6, window_bounds = array<i64: 1, 32>}, {transform_indices = @transform_7, window_bounds = array<i64: 48, 32>}, {transform_indices = @transform_8, window_bounds = array<i64: 48, 32>}]} {
    %c0 = arith.constant 0 : index
    %c0_0 = arith.constant 0 : index
    %0 = vector.load %arg1[%c0, %c0_0] : memref<48x32xf32, #tpu.memory_space<vmem>>, vector<48x32xf32>
    %1 = arith.truncf %0 : vector<48x32xf32> to vector<48x32xbf16>
    %c0_1 = arith.constant 0 : index
    %c0_2 = arith.constant 0 : index
    %2 = vector.load %arg2[%c0_1, %c0_2] : memref<48x32xf32, #tpu.memory_space<vmem>>, vector<48x32xf32>
    %3 = arith.truncf %2 : vector<48x32xf32> to vector<48x32xbf16>
    %c0_3 = arith.constant 0 : index
    %c0_4 = arith.constant 0 : index
    %4 = vector.load %arg3[%c0_3, %c0_4] : memref<48x32xf32, #tpu.memory_space<vmem>>, vector<48x32xf32>
    %5 = arith.truncf %4 : vector<48x32xf32> to vector<48x32xbf16>
    %6 = tpu.concatenate %1, %3, %5 in 1 : vector<48x32xbf16>, vector<48x32xbf16>, vector<48x32xbf16> -> vector<48x96xbf16>
    %c0_5 = arith.constant 0 : index
    %c0_6 = arith.constant 0 : index
    %7 = vector.load %arg4[%c0_5, %c0_6] : memref<96x32xbf16, #tpu.memory_space<vmem>>, vector<96x32xbf16>
    %cst = arith.constant dense<0.000000e+00> : vector<48x32xf32>
    %8 = tpu.matmul %6, %7, %cst {dimension_numbers = #tpu.dot_dimension_numbers<[1], [0], [0], [1], [0, 0, 1, 1], [], []>} : vector<48x96xbf16>, vector<96x32xbf16>, vector<48x32xf32> -> vector<48x32xf32>
    %9 = arith.negf %8 : vector<48x32xf32>
    %10 = math.exp %9 : vector<48x32xf32>
    %cst_7 = arith.constant 1.000000e+00 : f32
    %11 = vector.broadcast %cst_7 : f32 to vector<48x32xf32>
    %12 = arith.addf %11, %10 : vector<48x32xf32>
    %13 = arith.divf %11, %12 : vector<48x32xf32>
    %14 = arith.mulf %8, %13 : vector<48x32xf32>
    %15 = arith.truncf %14 : vector<48x32xf32> to vector<48x32xbf16>
    %c0_8 = arith.constant 0 : index
    %c0_9 = arith.constant 0 : index
    %16 = vector.load %arg5[%c0_8, %c0_9] : memref<32x32xbf16, #tpu.memory_space<vmem>>, vector<32x32xbf16>
    %cst_10 = arith.constant dense<0.000000e+00> : vector<48x32xf32>
    %17 = tpu.matmul %15, %16, %cst_10 {dimension_numbers = #tpu.dot_dimension_numbers<[1], [0], [0], [1], [0, 0, 1, 1], [], []>} : vector<48x32xbf16>, vector<32x32xbf16>, vector<48x32xf32> -> vector<48x32xf32>
    %cst_11 = arith.constant dense<0.000000e+00> : vector<48xf32>
    %18 = vector.multi_reduction <add>, %17, %cst_11 [1] : vector<48x32xf32> to vector<48xf32>
    %19 = vector.shape_cast %18 : vector<48xf32> to vector<48x1xf32>
    %cst_12 = arith.constant 3.200000e+01 : f32
    %20 = vector.broadcast %cst_12 : f32 to vector<48x1xf32>
    %21 = arith.divf %19, %20 : vector<48x1xf32>
    %22 = vector.broadcast %21 : vector<48x1xf32> to vector<48x32xf32>
    %23 = arith.subf %17, %22 : vector<48x32xf32>
    %24 = arith.mulf %23, %23 : vector<48x32xf32>
    %cst_13 = arith.constant dense<0.000000e+00> : vector<48xf32>
    %25 = vector.multi_reduction <add>, %24, %cst_13 [1] : vector<48x32xf32> to vector<48xf32>
    %26 = vector.shape_cast %25 : vector<48xf32> to vector<48x1xf32>
    %cst_14 = arith.constant 3.200000e+01 : f32
    %27 = vector.broadcast %cst_14 : f32 to vector<48x1xf32>
    %28 = arith.divf %26, %27 : vector<48x1xf32>
    %cst_15 = arith.constant 9.99999974E-6 : f32
    %29 = vector.broadcast %cst_15 : f32 to vector<48x1xf32>
    %30 = arith.addf %28, %29 : vector<48x1xf32>
    %31 = math.rsqrt %30 : vector<48x1xf32>
    %32 = vector.broadcast %31 : vector<48x1xf32> to vector<48x32xf32>
    %33 = arith.mulf %23, %32 : vector<48x32xf32>
    %c0_16 = arith.constant 0 : index
    %c0_17 = arith.constant 0 : index
    %34 = vector.load %arg6[%c0_16, %c0_17] : memref<1x32xf32, #tpu.memory_space<vmem>>, vector<1x32xf32>
    %35 = vector.broadcast %34 : vector<1x32xf32> to vector<48x32xf32>
    %36 = arith.mulf %33, %35 : vector<48x32xf32>
    %c0_18 = arith.constant 0 : index
    %c0_19 = arith.constant 0 : index
    %37 = vector.load %arg7[%c0_18, %c0_19] : memref<1x32xf32, #tpu.memory_space<vmem>>, vector<1x32xf32>
    %38 = vector.broadcast %37 : vector<1x32xf32> to vector<48x32xf32>
    %39 = arith.addf %36, %38 : vector<48x32xf32>
    %c0_20 = arith.constant 0 : index
    %c0_21 = arith.constant 0 : index
    %40 = vector.load %arg8[%c0_20, %c0_21] : memref<48x32xf32, #tpu.memory_space<vmem>>, vector<48x32xf32>
    %41 = arith.addf %39, %40 : vector<48x32xf32>
    %c0_22 = arith.constant 0 : index
    %c0_23 = arith.constant 0 : index
    %42 = vector.load %arg9[%c0_22, %c0_23] : memref<48x32xf32, #tpu.memory_space<vmem>>, vector<48x32xf32>
    tpu.vector_store %arg9[%c0_22, %c0_23], %41 {strides = array<i32>} : memref<48x32xf32, #tpu.memory_space<vmem>>, vector<48x32xf32>,
    return
  }
  func.func @transform_0(%arg0: i32) -> (i32, i32) {
    %c0_i32 = arith.constant 0 : i32
    %c0_i32_0 = arith.constant 0 : i32
    return %arg0, %c0_i32 : i32, i32
  }
  func.func @transform_1(%arg0: i32) -> (i32, i32) {
    %c0_i32 = arith.constant 0 : i32
    %c0_i32_0 = arith.constant 0 : i32
    return %arg0, %c0_i32 : i32, i32
  }
  func.func @transform_2(%arg0: i32) -> (i32, i32) {
    %c0_i32 = arith.constant 0 : i32
    %c0_i32_0 = arith.constant 0 : i32
    return %arg0, %c0_i32 : i32, i32
  }
  func.func @transform_3(%arg0: i32) -> (i32, i32) {
    %c0_i32 = arith.constant 0 : i32
    %c0_i32_0 = arith.constant 0 : i32
    %c0_i32_1 = arith.constant 0 : i32
    return %c0_i32, %c0_i32_0 : i32, i32
  }
  func.func @transform_4(%arg0: i32) -> (i32, i32) {
    %c0_i32 = arith.constant 0 : i32
    %c0_i32_0 = arith.constant 0 : i32
    %c0_i32_1 = arith.constant 0 : i32
    return %c0_i32, %c0_i32_0 : i32, i32
  }
  func.func @transform_5(%arg0: i32) -> (i32, i32) {
    %c0_i32 = arith.constant 0 : i32
    %c0_i32_0 = arith.constant 0 : i32
    %c0_i32_1 = arith.constant 0 : i32
    return %c0_i32, %c0_i32_0 : i32, i32
  }
  func.func @transform_6(%arg0: i32) -> (i32, i32) {
    %c0_i32 = arith.constant 0 : i32
    %c0_i32_0 = arith.constant 0 : i32
    %c0_i32_1 = arith.constant 0 : i32
    return %c0_i32, %c0_i32_0 : i32, i32
  }
  func.func @transform_7(%arg0: i32) -> (i32, i32) {
    %c0_i32 = arith.constant 0 : i32
    %c0_i32_0 = arith.constant 0 : i32
    return %arg0, %c0_i32 : i32, i32
  }
  func.func @transform_8(%arg0: i32) -> (i32, i32) {
    %c0_i32 = arith.constant 0 : i32
    %c0_i32_0 = arith.constant 0 : i32
    return %arg0, %c0_i32 : i32, i32
  }
}

module attributes {stable_mosaic.version = 11 : i64} {
  func.func @kernel(%arg0: i32, %arg1: memref<24x32xf32, #tpu.memory_space<vmem>>, %arg2: memref<24x32xf32, #tpu.memory_space<vmem>>, %arg3: memref<64x32xbf16, #tpu.memory_space<vmem>>, %arg4: memref<32x32xbf16, #tpu.memory_space<vmem>>, %arg5: memref<1x32xf32, #tpu.memory_space<vmem>>, %arg6: memref<1x32xf32, #tpu.memory_space<vmem>>, %arg7: memref<24x32xf32, #tpu.memory_space<vmem>>, %arg8: memref<24x32xf32, #tpu.memory_space<vmem>>) attributes {dimension_semantics = [#tpu.dimension_semantics<parallel>], iteration_bounds = array<i64: 1>, scalar_prefetch = 0 : i64, scratch_operands = 0 : i64, tpu.core_type = #tpu.core_type<tc>, window_params = [{transform_indices = @transform_0, window_bounds = array<i64: 24, 32>}, {transform_indices = @transform_1, window_bounds = array<i64: 24, 32>}, {pipeline_mode = #tpu.pipeline_mode<synchronous>, transform_indices = @transform_2, window_bounds = array<i64: 64, 32>}, {pipeline_mode = #tpu.pipeline_mode<synchronous>, transform_indices = @transform_3, window_bounds = array<i64: 32, 32>}, {pipeline_mode = #tpu.pipeline_mode<synchronous>, transform_indices = @transform_4, window_bounds = array<i64: 1, 32>}, {pipeline_mode = #tpu.pipeline_mode<synchronous>, transform_indices = @transform_5, window_bounds = array<i64: 1, 32>}, {transform_indices = @transform_6, window_bounds = array<i64: 24, 32>}, {transform_indices = @transform_7, window_bounds = array<i64: 24, 32>}]} {
    %c0 = arith.constant 0 : index
    %c0_0 = arith.constant 0 : index
    %0 = vector.load %arg1[%c0, %c0_0] : memref<24x32xf32, #tpu.memory_space<vmem>>, vector<24x32xf32>
    %1 = arith.truncf %0 : vector<24x32xf32> to vector<24x32xbf16>
    %c0_1 = arith.constant 0 : index
    %c0_2 = arith.constant 0 : index
    %2 = vector.load %arg2[%c0_1, %c0_2] : memref<24x32xf32, #tpu.memory_space<vmem>>, vector<24x32xf32>
    %3 = arith.truncf %2 : vector<24x32xf32> to vector<24x32xbf16>
    %4 = tpu.concatenate %1, %3 in 1 : vector<24x32xbf16>, vector<24x32xbf16> -> vector<24x64xbf16>
    %c0_3 = arith.constant 0 : index
    %c0_4 = arith.constant 0 : index
    %5 = vector.load %arg3[%c0_3, %c0_4] : memref<64x32xbf16, #tpu.memory_space<vmem>>, vector<64x32xbf16>
    %cst = arith.constant dense<0.000000e+00> : vector<24x32xf32>
    %6 = tpu.matmul %4, %5, %cst {dimension_numbers = #tpu.dot_dimension_numbers<[1], [0], [0], [1], [0, 0, 1, 1], [], []>} : vector<24x64xbf16>, vector<64x32xbf16>, vector<24x32xf32> -> vector<24x32xf32>
    %7 = arith.negf %6 : vector<24x32xf32>
    %8 = math.exp %7 : vector<24x32xf32>
    %cst_5 = arith.constant 1.000000e+00 : f32
    %9 = vector.broadcast %cst_5 : f32 to vector<24x32xf32>
    %10 = arith.addf %9, %8 : vector<24x32xf32>
    %11 = arith.divf %9, %10 : vector<24x32xf32>
    %12 = arith.mulf %6, %11 : vector<24x32xf32>
    %13 = arith.truncf %12 : vector<24x32xf32> to vector<24x32xbf16>
    %c0_6 = arith.constant 0 : index
    %c0_7 = arith.constant 0 : index
    %14 = vector.load %arg4[%c0_6, %c0_7] : memref<32x32xbf16, #tpu.memory_space<vmem>>, vector<32x32xbf16>
    %cst_8 = arith.constant dense<0.000000e+00> : vector<24x32xf32>
    %15 = tpu.matmul %13, %14, %cst_8 {dimension_numbers = #tpu.dot_dimension_numbers<[1], [0], [0], [1], [0, 0, 1, 1], [], []>} : vector<24x32xbf16>, vector<32x32xbf16>, vector<24x32xf32> -> vector<24x32xf32>
    %cst_9 = arith.constant dense<0.000000e+00> : vector<24xf32>
    %16 = vector.multi_reduction <add>, %15, %cst_9 [1] : vector<24x32xf32> to vector<24xf32>
    %17 = vector.shape_cast %16 : vector<24xf32> to vector<24x1xf32>
    %cst_10 = arith.constant 3.200000e+01 : f32
    %18 = vector.broadcast %cst_10 : f32 to vector<24x1xf32>
    %19 = arith.divf %17, %18 : vector<24x1xf32>
    %20 = vector.broadcast %19 : vector<24x1xf32> to vector<24x32xf32>
    %21 = arith.subf %15, %20 : vector<24x32xf32>
    %22 = arith.mulf %21, %21 : vector<24x32xf32>
    %cst_11 = arith.constant dense<0.000000e+00> : vector<24xf32>
    %23 = vector.multi_reduction <add>, %22, %cst_11 [1] : vector<24x32xf32> to vector<24xf32>
    %24 = vector.shape_cast %23 : vector<24xf32> to vector<24x1xf32>
    %cst_12 = arith.constant 3.200000e+01 : f32
    %25 = vector.broadcast %cst_12 : f32 to vector<24x1xf32>
    %26 = arith.divf %24, %25 : vector<24x1xf32>
    %cst_13 = arith.constant 9.99999974E-6 : f32
    %27 = vector.broadcast %cst_13 : f32 to vector<24x1xf32>
    %28 = arith.addf %26, %27 : vector<24x1xf32>
    %29 = math.rsqrt %28 : vector<24x1xf32>
    %30 = vector.broadcast %29 : vector<24x1xf32> to vector<24x32xf32>
    %31 = arith.mulf %21, %30 : vector<24x32xf32>
    %c0_14 = arith.constant 0 : index
    %c0_15 = arith.constant 0 : index
    %32 = vector.load %arg5[%c0_14, %c0_15] : memref<1x32xf32, #tpu.memory_space<vmem>>, vector<1x32xf32>
    %33 = vector.broadcast %32 : vector<1x32xf32> to vector<24x32xf32>
    %34 = arith.mulf %31, %33 : vector<24x32xf32>
    %c0_16 = arith.constant 0 : index
    %c0_17 = arith.constant 0 : index
    %35 = vector.load %arg6[%c0_16, %c0_17] : memref<1x32xf32, #tpu.memory_space<vmem>>, vector<1x32xf32>
    %36 = vector.broadcast %35 : vector<1x32xf32> to vector<24x32xf32>
    %37 = arith.addf %34, %36 : vector<24x32xf32>
    %c0_18 = arith.constant 0 : index
    %c0_19 = arith.constant 0 : index
    %38 = vector.load %arg7[%c0_18, %c0_19] : memref<24x32xf32, #tpu.memory_space<vmem>>, vector<24x32xf32>
    %39 = arith.addf %37, %38 : vector<24x32xf32>
    %c0_20 = arith.constant 0 : index
    %c0_21 = arith.constant 0 : index
    %40 = vector.load %arg8[%c0_20, %c0_21] : memref<24x32xf32, #tpu.memory_space<vmem>>, vector<24x32xf32>
    tpu.vector_store %arg8[%c0_20, %c0_21], %39 {strides = array<i32>} : memref<24x32xf32, #tpu.memory_space<vmem>>, vector<24x32xf32>,
    return
  }
  func.func @transform_0(%arg0: i32) -> (i32, i32) {
    %c0_i32 = arith.constant 0 : i32
    %c0_i32_0 = arith.constant 0 : i32
    return %arg0, %c0_i32 : i32, i32
  }
  func.func @transform_1(%arg0: i32) -> (i32, i32) {
    %c0_i32 = arith.constant 0 : i32
    %c0_i32_0 = arith.constant 0 : i32
    return %arg0, %c0_i32 : i32, i32
  }
  func.func @transform_2(%arg0: i32) -> (i32, i32) {
    %c0_i32 = arith.constant 0 : i32
    %c0_i32_0 = arith.constant 0 : i32
    %c0_i32_1 = arith.constant 0 : i32
    return %c0_i32, %c0_i32_0 : i32, i32
  }
  func.func @transform_3(%arg0: i32) -> (i32, i32) {
    %c0_i32 = arith.constant 0 : i32
    %c0_i32_0 = arith.constant 0 : i32
    %c0_i32_1 = arith.constant 0 : i32
    return %c0_i32, %c0_i32_0 : i32, i32
  }
  func.func @transform_4(%arg0: i32) -> (i32, i32) {
    %c0_i32 = arith.constant 0 : i32
    %c0_i32_0 = arith.constant 0 : i32
    %c0_i32_1 = arith.constant 0 : i32
    return %c0_i32, %c0_i32_0 : i32, i32
  }
  func.func @transform_5(%arg0: i32) -> (i32, i32) {
    %c0_i32 = arith.constant 0 : i32
    %c0_i32_0 = arith.constant 0 : i32
    %c0_i32_1 = arith.constant 0 : i32
    return %c0_i32, %c0_i32_0 : i32, i32
  }
  func.func @transform_6(%arg0: i32) -> (i32, i32) {
    %c0_i32 = arith.constant 0 : i32
    %c0_i32_0 = arith.constant 0 : i32
    return %arg0, %c0_i32 : i32, i32
  }
  func.func @transform_7(%arg0: i32) -> (i32, i32) {
    %c0_i32 = arith.constant 0 : i32
    %c0_i32_0 = arith.constant 0 : i32
    return %arg0, %c0_i32 : i32, i32
  }
}

module attributes {stable_mosaic.version = 11 : i64} {
  func.func @kernel(%arg0: i32, %arg1: memref<1x24xi32, #tpu.memory_space<vmem>>, %arg2: memref<1x24x32xf32, #tpu.memory_space<vmem>>, %arg3: memref<1x12x32xf32, #tpu.memory_space<vmem>>) attributes {dimension_semantics = [#tpu.dimension_semantics<parallel>], iteration_bounds = array<i64: 2>, scalar_prefetch = 0 : i64, scratch_operands = 0 : i64, tpu.core_type = #tpu.core_type<tc>, window_params = [{pipeline_mode = #tpu.pipeline_mode<synchronous>, transform_indices = @transform_0, window_bounds = array<i64: 1, 24>}, {transform_indices = @transform_1, window_bounds = array<i64: 1, 24, 32>}, {transform_indices = @transform_2, window_bounds = array<i64: 1, 12, 32>}]} {
    %0 = tpu.iota {dimensions = array<i32: 0>} : vector<12x24xi32>
    %c0 = arith.constant 0 : index
    %c0_0 = arith.constant 0 : index
    %1 = vector.load %arg1[%c0, %c0_0] : memref<1x24xi32, #tpu.memory_space<vmem>>, vector<1x24xi32>
    %2 = vector.broadcast %1 : vector<1x24xi32> to vector<12x24xi32>
    %3 = arith.cmpi eq, %0, %2 : vector<12x24xi32>
    %4 = arith.extui %3 : vector<12x24xi1> to vector<12x24xi32>
    %5 = arith.sitofp %4 : vector<12x24xi32> to vector<12x24xf32>
    %c0_1 = arith.constant 0 : index
    %c0_2 = arith.constant 0 : index
    %c0_3 = arith.constant 0 : index
    %6 = vector.load %arg2[%c0_1, %c0_2, %c0_3] : memref<1x24x32xf32, #tpu.memory_space<vmem>>, vector<1x24x32xf32>
    %7 = vector.shape_cast %6 : vector<1x24x32xf32> to vector<24x32xf32>
    %cst = arith.constant dense<0.000000e+00> : vector<12x32xf32>
    %8 = tpu.matmul %5, %7, %cst {dimension_numbers = #tpu.dot_dimension_numbers<[1], [0], [0], [1], [0, 0, 1, 1], [], []>} : vector<12x24xf32>, vector<24x32xf32>, vector<12x32xf32> -> vector<12x32xf32>
    %c0_4 = arith.constant 0 : index
    %c0_5 = arith.constant 0 : index
    %c0_6 = arith.constant 0 : index
    %9 = vector.load %arg3[%c0_4, %c0_5, %c0_6] : memref<1x12x32xf32, #tpu.memory_space<vmem>>, vector<1x12x32xf32>
    %10 = vector.shape_cast %9 : vector<1x12x32xf32> to vector<12x32xf32>
    %11 = vector.shape_cast %8 : vector<12x32xf32> to vector<1x12x32xf32>
    tpu.vector_store %arg3[%c0_4, %c0_5, %c0_6], %11 {strides = array<i32>} : memref<1x12x32xf32, #tpu.memory_space<vmem>>, vector<1x12x32xf32>,
    return
  }
  func.func @transform_0(%arg0: i32) -> (i32, i32) {
    %c0_i32 = arith.constant 0 : i32
    %c0_i32_0 = arith.constant 0 : i32
    %c0_i32_1 = arith.constant 0 : i32
    return %c0_i32, %c0_i32_0 : i32, i32
  }
  func.func @transform_1(%arg0: i32) -> (i32, i32, i32) {
    %c0_i32 = arith.constant 0 : i32
    %c0_i32_0 = arith.constant 0 : i32
    %c0_i32_1 = arith.constant 0 : i32
    return %arg0, %c0_i32, %c0_i32_0 : i32, i32, i32
  }
  func.func @transform_2(%arg0: i32) -> (i32, i32, i32) {
    %c0_i32 = arith.constant 0 : i32
    %c0_i32_0 = arith.constant 0 : i32
    %c0_i32_1 = arith.constant 0 : i32
    return %arg0, %c0_i32, %c0_i32_0 : i32, i32, i32
  }
}

module attributes {stable_mosaic.version = 11 : i64} {
  func.func @kernel(%arg0: i32, %arg1: memref<32x32xf32, #tpu.memory_space<vmem>>, %arg2: memref<32x32xbf16, #tpu.memory_space<vmem>>, %arg3: memref<32x32xbf16, #tpu.memory_space<vmem>>, %arg4: memref<1x32xf32, #tpu.memory_space<vmem>>, %arg5: memref<1x32xf32, #tpu.memory_space<vmem>>, %arg6: memref<32x32xf32, #tpu.memory_space<vmem>>, %arg7: memref<32x32xf32, #tpu.memory_space<vmem>>) attributes {dimension_semantics = [#tpu.dimension_semantics<parallel>], iteration_bounds = array<i64: 1>, scalar_prefetch = 0 : i64, scratch_operands = 0 : i64, tpu.core_type = #tpu.core_type<tc>, window_params = [{transform_indices = @transform_0, window_bounds = array<i64: 32, 32>}, {pipeline_mode = #tpu.pipeline_mode<synchronous>, transform_indices = @transform_1, window_bounds = array<i64: 32, 32>}, {pipeline_mode = #tpu.pipeline_mode<synchronous>, transform_indices = @transform_2, window_bounds = array<i64: 32, 32>}, {pipeline_mode = #tpu.pipeline_mode<synchronous>, transform_indices = @transform_3, window_bounds = array<i64: 1, 32>}, {pipeline_mode = #tpu.pipeline_mode<synchronous>, transform_indices = @transform_4, window_bounds = array<i64: 1, 32>}, {transform_indices = @transform_5, window_bounds = array<i64: 32, 32>}, {transform_indices = @transform_6, window_bounds = array<i64: 32, 32>}]} {
    %c0 = arith.constant 0 : index
    %c0_0 = arith.constant 0 : index
    %0 = vector.load %arg1[%c0, %c0_0] : memref<32x32xf32, #tpu.memory_space<vmem>>, vector<32x32xf32>
    %1 = arith.truncf %0 : vector<32x32xf32> to vector<32x32xbf16>
    %c0_1 = arith.constant 0 : index
    %c0_2 = arith.constant 0 : index
    %2 = vector.load %arg2[%c0_1, %c0_2] : memref<32x32xbf16, #tpu.memory_space<vmem>>, vector<32x32xbf16>
    %cst = arith.constant dense<0.000000e+00> : vector<32x32xf32>
    %3 = tpu.matmul %1, %2, %cst {dimension_numbers = #tpu.dot_dimension_numbers<[1], [0], [0], [1], [0, 0, 1, 1], [], []>} : vector<32x32xbf16>, vector<32x32xbf16>, vector<32x32xf32> -> vector<32x32xf32>
    %4 = arith.negf %3 : vector<32x32xf32>
    %5 = math.exp %4 : vector<32x32xf32>
    %cst_3 = arith.constant 1.000000e+00 : f32
    %6 = vector.broadcast %cst_3 : f32 to vector<32x32xf32>
    %7 = arith.addf %6, %5 : vector<32x32xf32>
    %8 = arith.divf %6, %7 : vector<32x32xf32>
    %9 = arith.mulf %3, %8 : vector<32x32xf32>
    %10 = arith.truncf %9 : vector<32x32xf32> to vector<32x32xbf16>
    %c0_4 = arith.constant 0 : index
    %c0_5 = arith.constant 0 : index
    %11 = vector.load %arg3[%c0_4, %c0_5] : memref<32x32xbf16, #tpu.memory_space<vmem>>, vector<32x32xbf16>
    %cst_6 = arith.constant dense<0.000000e+00> : vector<32x32xf32>
    %12 = tpu.matmul %10, %11, %cst_6 {dimension_numbers = #tpu.dot_dimension_numbers<[1], [0], [0], [1], [0, 0, 1, 1], [], []>} : vector<32x32xbf16>, vector<32x32xbf16>, vector<32x32xf32> -> vector<32x32xf32>
    %cst_7 = arith.constant dense<0.000000e+00> : vector<32xf32>
    %13 = vector.multi_reduction <add>, %12, %cst_7 [1] : vector<32x32xf32> to vector<32xf32>
    %14 = vector.shape_cast %13 : vector<32xf32> to vector<32x1xf32>
    %cst_8 = arith.constant 3.200000e+01 : f32
    %15 = vector.broadcast %cst_8 : f32 to vector<32x1xf32>
    %16 = arith.divf %14, %15 : vector<32x1xf32>
    %17 = vector.broadcast %16 : vector<32x1xf32> to vector<32x32xf32>
    %18 = arith.subf %12, %17 : vector<32x32xf32>
    %19 = arith.mulf %18, %18 : vector<32x32xf32>
    %cst_9 = arith.constant dense<0.000000e+00> : vector<32xf32>
    %20 = vector.multi_reduction <add>, %19, %cst_9 [1] : vector<32x32xf32> to vector<32xf32>
    %21 = vector.shape_cast %20 : vector<32xf32> to vector<32x1xf32>
    %cst_10 = arith.constant 3.200000e+01 : f32
    %22 = vector.broadcast %cst_10 : f32 to vector<32x1xf32>
    %23 = arith.divf %21, %22 : vector<32x1xf32>
    %cst_11 = arith.constant 9.99999974E-6 : f32
    %24 = vector.broadcast %cst_11 : f32 to vector<32x1xf32>
    %25 = arith.addf %23, %24 : vector<32x1xf32>
    %26 = math.rsqrt %25 : vector<32x1xf32>
    %27 = vector.broadcast %26 : vector<32x1xf32> to vector<32x32xf32>
    %28 = arith.mulf %18, %27 : vector<32x32xf32>
    %c0_12 = arith.constant 0 : index
    %c0_13 = arith.constant 0 : index
    %29 = vector.load %arg4[%c0_12, %c0_13] : memref<1x32xf32, #tpu.memory_space<vmem>>, vector<1x32xf32>
    %30 = vector.broadcast %29 : vector<1x32xf32> to vector<32x32xf32>
    %31 = arith.mulf %28, %30 : vector<32x32xf32>
    %c0_14 = arith.constant 0 : index
    %c0_15 = arith.constant 0 : index
    %32 = vector.load %arg5[%c0_14, %c0_15] : memref<1x32xf32, #tpu.memory_space<vmem>>, vector<1x32xf32>
    %33 = vector.broadcast %32 : vector<1x32xf32> to vector<32x32xf32>
    %34 = arith.addf %31, %33 : vector<32x32xf32>
    %c0_16 = arith.constant 0 : index
    %c0_17 = arith.constant 0 : index
    %35 = vector.load %arg6[%c0_16, %c0_17] : memref<32x32xf32, #tpu.memory_space<vmem>>, vector<32x32xf32>
    %36 = arith.addf %34, %35 : vector<32x32xf32>
    %c0_18 = arith.constant 0 : index
    %c0_19 = arith.constant 0 : index
    %37 = vector.load %arg7[%c0_18, %c0_19] : memref<32x32xf32, #tpu.memory_space<vmem>>, vector<32x32xf32>
    tpu.vector_store %arg7[%c0_18, %c0_19], %36 {strides = array<i32>} : memref<32x32xf32, #tpu.memory_space<vmem>>, vector<32x32xf32>,
    return
  }
  func.func @transform_0(%arg0: i32) -> (i32, i32) {
    %c0_i32 = arith.constant 0 : i32
    %c0_i32_0 = arith.constant 0 : i32
    return %arg0, %c0_i32 : i32, i32
  }
  func.func @transform_1(%arg0: i32) -> (i32, i32) {
    %c0_i32 = arith.constant 0 : i32
    %c0_i32_0 = arith.constant 0 : i32
    %c0_i32_1 = arith.constant 0 : i32
    return %c0_i32, %c0_i32_0 : i32, i32
  }
  func.func @transform_2(%arg0: i32) -> (i32, i32) {
    %c0_i32 = arith.constant 0 : i32
    %c0_i32_0 = arith.constant 0 : i32
    %c0_i32_1 = arith.constant 0 : i32
    return %c0_i32, %c0_i32_0 : i32, i32
  }
  func.func @transform_3(%arg0: i32) -> (i32, i32) {
    %c0_i32 = arith.constant 0 : i32
    %c0_i32_0 = arith.constant 0 : i32
    %c0_i32_1 = arith.constant 0 : i32
    return %c0_i32, %c0_i32_0 : i32, i32
  }
  func.func @transform_4(%arg0: i32) -> (i32, i32) {
    %c0_i32 = arith.constant 0 : i32
    %c0_i32_0 = arith.constant 0 : i32
    %c0_i32_1 = arith.constant 0 : i32
    return %c0_i32, %c0_i32_0 : i32, i32
  }
  func.func @transform_5(%arg0: i32) -> (i32, i32) {
    %c0_i32 = arith.constant 0 : i32
    %c0_i32_0 = arith.constant 0 : i32
    return %arg0, %c0_i32 : i32, i32
  }
  func.func @transform_6(%arg0: i32) -> (i32, i32) {
    %c0_i32 = arith.constant 0 : i32
    %c0_i32_0 = arith.constant 0 : i32
    return %arg0, %c0_i32 : i32, i32
  }
}

</mosaic_0001>

<bundles_post_ra>
// kernel: g2m_gnn_forward.5
= control target key start
LH: loop header
LB: loop body
LE: loop exit
PB: predicated region body
PF: predicated region fallthrough
CT: control target
= control target key end

     0   :  { %s370_s9 = smov 0   ;;  %s392_s0 = inlined_call_operand.vmem [shape: s32[1,24], index: 0, kind: input, shape index: {}]   ;;  %s393_s1 = inlined_call_operand.vmem [shape: f32[2,24,32], index: 1, kind: input, shape index: {}]   ;;  %s394_s2 = inlined_call_operand.vmem [shape: f32[2,12,32], index: 2, kind: output, shape index: {}]  }
   0x1 LB: > { %s302_s10 = sadd.s32 4294967295, %s352_s9   ;;  %p306_p0 = scmp.ge.s32.totalorder %s352_s9, 1  ;;  %s352_s9 = sphi %s370_s9, %s12_s9  }
   0x2   : > { %p112_p1 = scmp.lt.s32.totalorder %s352_s9, 3 }
   0x4   : > { %p113_p2 = pnand %p306_p0, %p112_p1 }
   0x5   : > { %p134_p3 = scmp.lt.s32.totalorder (!%p113_p2), %s302_s10, 1  ;;  %v144_v0 = vlaneseq (!%p113_p2)  ;;  %v310_v1 = vld [vmem:[%s392_s0] ss:$0 sm:$0xff] (!%p113_p2)  ;;  %vm161_vm0 = vcmask (!%p113_p2), 195584   ;;  %v354_v3 = vmov (!%p113_p2), 0.0   ;;  %vm245_vm3 = vcmask (!%p113_p2), 257024  }
   0x6   : > { %116 = sbr.rel (%p113_p2) target bundleno = 240 (0xf0), region = 28  ;;  %vm243_vm4 = vcmask (!%p113_p2), 261120  }
   0x7   : > { %v145_v2 = vshrl.u32 (!%p113_p2), %v144_v0, 7 }
   0x9   : > { %vm152_vm1 = vcmp.eq.s32.totalorder (!%p113_p2), %v145_v2, %v310_v1  ;;  %v146_v5 = vadd.s32 (!%p113_p2), 8, %v145_v2 }
   0xa   : > { %v311_v4 = vsel (!%p113_p2), %vm152_vm1, 1.0, %v354_v3 }
   0xb   : > { %329 = vmatprep.mubr.msk.f32.mxu0 (!%p113_p2), %vm161_vm0, %v311_v4  ;;  %vm153_vm2 = vcmp.eq.s32.totalorder (!%p113_p2), %v146_v5, %v310_v1 }
   0xc   : > { %v312_v10 = vsel (!%p113_p2), %vm153_vm2, 1.0, %v354_v3 }
   0xd   : > { %s396_s10 = smov (!%p134_p3, %s302_s10), 1 }
   0xe   : > { %s336_s13 = smul.u32 24, %s396_s10  ;;  %s317_s17 = sshll.u32 %s396_s10, 4 }
   0xf   : > { %s143_s20 = scalar_lea.vmem %s394_s2, %s317_s17 }
  0x10   : > { %s138_s16 = scalar_lea.vmem %s393_s1, %s336_s13 }
  0x11   : > { %v158_v6 = vld [vmem:[%s138_s16] sm:$0xff]  ;;  %v159_v7 = vld [vmem:[%s138_s16 + $0x8] sm:$0xff]  ;;  %v160_v9 = vld [vmem:[%s138_s16 + $0x10] sm:$0xff] }
  0x12   : > { %v332_v8 = vpack.c.bf16 %v159_v7, %v158_v6 }
  0x14   : > { %333 = vmatprep.subr.bf16.mxu0 %v332_v8 }
  0x15   : > { %335 = vmatpush3.bf16.msra.mxu0 %v332_v8 }
  0x16   : > { %327 = vmatprep.subr.mxu0 %v160_v9 }
  0x19   : > { %328 = vmatpush3.msra.mxu0 %v160_v9 }
  0x1a   : > { %330 = vmatmul.mubr.msk.f32.vlgmr.msra.gmra.mrb[0].mxu0 %vm161_vm0, %v312_v10 }
  0xed   : > { %v331_v11 = vpop.f32.mrb[0].mxu0 }
  0xee   : > { %246 = vst.msk [vmem:[%s143_s20 + $0x8] sm:$0xf] %vm245_vm3, %v331_v11  ;;  %v234_v12 = vpop.f32.mrb[1].mxu0 }
  0xef   : > { %244 = vst.msk [vmem:[%s143_s20] sm:$0xff] %vm243_vm4, %v234_v12 }
  0xf0 PF: > { %s12_s9 = sadd.s32 1, %s352_s9  }
  0xf1   : > { %p9_p4 = scmp.ge.s32.totalorder %s12_s9, 4  }
  0xf3   :  { %11 = sbr.rel (!%p9_p4) target bundleno = 1 (0x1), region = 58 }

// kernel: g2m_gnn_forward.6
= control target key start
LH: loop header
LB: loop body
LE: loop exit
PB: predicated region body
PF: predicated region fallthrough
CT: control target
= control target key end

     0   :  { %s371_s11 = smov 32   ;;  %vm43_vm0 = vcmask 261120   ;;  %vm82_vm1 = vcmask 523264   ;;  %s485_s1 = inlined_call_operand.vmem [shape: f32[24,32], index: 1, kind: input, shape index: {}]   ;;  %s486_s2 = inlined_call_operand.vmem [shape: bf16[64,32], index: 2, kind: input, shape index: {}]   ;;  %s487_s0 = inlined_call_operand.vmem [shape: f32[24,32], index: 0, kind: input, shape index: {}, may-alias: {0,6}]   ;;  %s488_s3 = inlined_call_operand.vmem [shape: bf16[32,32], index: 3, kind: input, shape index: {}]   ;;  %s489_s4 = inlined_call_operand.vmem [shape: f32[1,32], index: 4, kind: input, shape index: {}]   ;;  %s490_s5 = inlined_call_operand.vmem [shape: f32[1,32], index: 5, kind: input, shape index: {}]   ;;  %s491_s6 = inlined_call_operand.vmem [shape: f32[24,32], index: 6, kind: input, shape index: {}, may-alias: {0,6}]   ;;  %s492_s7 = inlined_call_operand.vmem [shape: f32[24,32], index: 7, kind: output, shape index: {}]  }
   0x1   :  { %v32_v0 = vld [vmem:[%s485_s1] sm:$0xff]  ;;  %v33_v1 = vld [vmem:[%s485_s1 + $0x8] sm:$0xff]  ;;  %v34_v2 = vld [vmem:[%s485_s1 + $0x10] sm:$0xff] }
   0x2   :  { %v35_v3 = vpack.c.bf16 %v33_v1, %v32_v0  ;;  %v347_v4 = vld [vmem:[%s486_s2] sm:$0xff]   ;;  %v348_v5 = vld [vmem:[%s486_s2 + $0x8] sm:$0xff]   ;;  %v36_v6 = vpack.c.bf16 %v34_v2, %v34_v2  ;;  %v349_v7 = vld [vmem:[%s486_s2 + $0x10] sm:$0xff]  }
   0x3   :  { %326 = vmatprep.subr.bf16.mxu0 %v347_v4  ;;  %v350_v8 = vld [vmem:[%s486_s2 + $0x18] sm:$0xff]   ;;  %v27_v9 = vld [vmem:[%s487_s0] sm:$0xff]  ;;  %v28_v10 = vld [vmem:[%s487_s0 + $0x8] sm:$0xff] }
   0x4   :  { %39 = vrot.lane.b32.xlu0 %v35_v3, %s371_s11  ;;  %327 = vmatpush3.bf16.msra.mxu0 %v347_v4  ;;  %v30_v11 = vpack.c.bf16 %v28_v10, %v27_v9  ;;  %v29_v12 = vld [vmem:[%s487_s0 + $0x10] sm:$0xff]  ;;  %v351_v18 = vld [vmem:[%s488_s3] sm:$0xff]   ;;  %v352_v19 = vld [vmem:[%s488_s3 + $0x8] sm:$0xff]  }
   0x5   :  { %328 = vmatprep.subr.bf16.mxu0 %v348_v5  ;;  %v31_v15 = vpack.c.bf16 %v29_v12, %v29_v12  ;;  %338 = vmatprep.subr.bf16.mxu1 %v351_v18  ;;  %v314_v9 = vld [vmem:[%s489_s4] ss:$0 sm:$0xff] }
   0x6   :  { %339 = vmatpush3.bf16.msra.mxu1 %v351_v18 }
   0x7   :  { %340 = vmatprep.subr.bf16.mxu1 %v352_v19 }
   0x8   :  { %41 = vrot.lane.b32.xlu0 %v36_v6, %s371_s11  ;;  %329 = vmatpush3.bf16.msra.mxu0 %v348_v5 }
   0x9   :  { %330 = vmatprep.subr.bf16.mxu0 %v349_v7 }
   0xa   :  { %341 = vmatpush3.bf16.msra.mxu1 %v352_v19 }
   0xc   :  { %331 = vmatpush3.bf16.msra.mxu0 %v349_v7 }
   0xd   :  { %332 = vmatprep.subr.bf16.mxu0 %v350_v8 }
  0x10   :  { %333 = vmatpush3.bf16.msra.mxu0 %v350_v8 }
  0x76   :  { %v40_v13 = vpop.permute.xlu0 %39 }
  0x77   :  { %v46_v14 = vsel %vm43_vm0, %v30_v11, %v40_v13  ;;  %v315_v11 = vld [vmem:[%s490_s5] ss:$0 sm:$0xff] }
  0x78   :  { %334 = vmatprep.mubr.msk.bf16.mxu0 %vm82_vm1, %v46_v14  ;;  %v288_v14 = vld [vmem:[%s491_s6] sm:$0xff] }
  0x7a   :  { %v42_v16 = vpop.permute.xlu0 %41 }
  0x7b   :  { %v49_v17 = vsel %vm43_vm0, %v31_v15, %v42_v16 }
  0x7c   :  { %335 = vmatmul.mubr.msk.bf16.vlgmr.msra.gmra.mrb[0].mxu0 %vm82_vm1, %v49_v17 }
 0x14f   :  { %v336_v20 = vpop.f32.mrb[0].mxu0 }
 0x150   :  { %v309_v21 = vmul.f32 -1.442695, %v336_v20  ;;  %v121_v22 = vpop.f32.mrb[1].mxu0 }
 0x151   :  { %v307_v23 = vmul.f32 -1.442695, %v121_v22  ;;  %v337_v24 = vpop.f32.mrb[2].mxu0 }
 0x152   :  { %353 = vpow2.f32 %v309_v21  ;;  %v124_v25 = vpop.f32.mrb[3].mxu0 }
 0x153   :  { %355 = vpow2.f32 %v307_v23  ;;  %v308_v26 = vmul.f32 -1.442695, %v124_v25 }
 0x155   :  { %357 = vpow2.f32 %v308_v26 }
 0x15c   :  { %v354_v27 = vpop.eup %353 }
 0x15d   :  { %v356_v28 = vpop.eup %355  ;;  %v146_v29 = vadd.f32 1.0, %v354_v27 }
 0x15e   :  { %v144_v30 = vadd.f32 1.0, %v356_v28 }
 0x15f   :  { %v358_v31 = vpop.eup %357  ;;  %359 = vrcp.f32 %v146_v29 }
 0x160   :  { %361 = vrcp.f32 %v144_v30  ;;  %v145_v32 = vadd.f32 1.0, %v358_v31 }
 0x162   :  { %363 = vrcp.f32 %v145_v32 }
 0x169   :  { %v360_v33 = vpop.eup %359 }
 0x16a   :  { %v362_v34 = vpop.eup %361  ;;  %v155_v36 = vmul.f32 %v360_v33, %v336_v20  ;;  %v289_v20 = vld [vmem:[%s491_s6 + $0x8] sm:$0xff] }
 0x16b   :  { %v153_v37 = vmul.f32 %v362_v34, %v121_v22 }
 0x16c   :  { %v364_v35 = vpop.eup %363  ;;  %v157_v40 = vpack.c.bf16 %v155_v36, %v155_v36 }
 0x16d   :  { %v154_v38 = vmul.f32 %v364_v35, %v124_v25  ;;  %v290_v25 = vld [vmem:[%s491_s6 + $0x10] sm:$0xff] }
 0x16f   :  { %v156_v39 = vpack.c.bf16 %v154_v38, %v153_v37 }
 0x171   :  { %342 = vmatprep.mubr.msk.bf16.mxu1 %vm43_vm0, %v156_v39 }
 0x172   :  { %343 = vmatmul.mubr.msk.bf16.vlgmr.msra.gmra.mrb[0].mxu1 %vm43_vm0, %v157_v40 }
 0x245   :  { %v344_v41 = vpop.f32.mrb[0].mxu1 }
 0x246   :  { %v214_v42 = vpop.f32.mrb[1].mxu1  ;;  %v234_v43 = vsel %vm43_vm0, %v344_v41, 0.0 }
 0x247   :  { %235 = vadd.xlane.f32.xlu0 %v234_v43  ;;  %v345_v44 = vpop.f32.mrb[2].mxu1  ;;  %v228_v45 = vsel %vm43_vm0, %v214_v42, 0.0 }
 0x248   :  { %229 = vadd.xlane.f32.xlu1 %v228_v45  ;;  %v217_v46 = vpop.f32.mrb[3].mxu1 }
 0x249   :  { %v231_v47 = vsel %vm43_vm0, %v217_v46, 0.0 }
 0x24c   :  { %232 = vadd.xlane.f32.xlu1 %v231_v47 }
 0x2d4   :  { %v236_v48 = vpop.xlane.xlu0 %235 }
 0x2d5   :  { %v230_v49 = vpop.xlane.xlu1 %229  ;;  %v240_v51 = vmul.f32 0.03125, %v236_v48 }
 0x2d6   :  { %v238_v50 = vmul.f32 0.03125, %v230_v49 }
 0x2d7   :  { %v243_v56 = vsub.f32 %v344_v41, %v240_v51 }
 0x2d8   :  { %v241_v52 = vsub.f32 %v214_v42, %v238_v50 }
 0x2d9   :  { %v233_v53 = vpop.xlane.xlu1 %232  ;;  %v246_v61 = vmul.f32 %v243_v56, %v243_v56 }
 0x2da   :  { %v239_v54 = vmul.f32 0.03125, %v233_v53  ;;  %v244_v55 = vmul.f32 %v241_v52, %v241_v52 }
 0x2db   :  { %v253_v62 = vsel %vm43_vm0, %v246_v61, 0.0 }
 0x2dc   :  { %v242_v57 = vsub.f32 %v217_v46, %v239_v54  ;;  %v247_v58 = vsel %vm43_vm0, %v244_v55, 0.0 }
 0x2dd   :  { %248 = vadd.xlane.f32.xlu1 %v247_v58 }
 0x2de   :  { %v245_v59 = vmul.f32 %v242_v57, %v242_v57 }
 0x2e0   :  { %v250_v60 = vsel %vm43_vm0, %v245_v59, 0.0 }
 0x2e1   :  { %251 = vadd.xlane.f32.xlu1 %v250_v60 }
 0x2e5   :  { %254 = vadd.xlane.f32.xlu1 %v253_v62 }
 0x36a   :  { %v249_v63 = vpop.xlane.xlu1 %248 }
 0x36b   :  { %v256_v0 = vmul.f32 0.03125, %v249_v63 }
 0x36d   :  { %v259_v1 = vadd.f32 1e-05, %v256_v0 }
 0x36e   :  { %v252_v2 = vpop.xlane.xlu1 %251 }
 0x36f   :  { %365 = vrsqrt.f32 %v259_v1  ;;  %v257_v3 = vmul.f32 0.03125, %v252_v2 }
 0x371   :  { %v260_v4 = vadd.f32 1e-05, %v257_v3 }
 0x372   :  { %v255_v5 = vpop.xlane.xlu1 %254 }
 0x373   :  { %367 = vrsqrt.f32 %v260_v4  ;;  %v258_v6 = vmul.f32 0.03125, %v255_v5 }
 0x375   :  { %v261_v7 = vadd.f32 1e-05, %v258_v6 }
 0x377   :  { %369 = vrsqrt.f32 %v261_v7 }
 0x379   :  { %v366_v8 = vpop.eup %365 }
 0x37a   :  { %v265_v10 = vmul.f32 %v366_v8, %v241_v52 }
 0x37c   :  { %v275_v12 = vmul.f32 %v314_v9, %v265_v10 }
 0x37d   :  { %v368_v13 = vpop.eup %367 }
 0x37e   :  { %v285_v15 = vadd.f32 %v315_v11, %v275_v12  ;;  %v266_v16 = vmul.f32 %v368_v13, %v242_v57 }
 0x380   :  { %v291_v17 = vadd.f32 %v288_v14, %v285_v15  ;;  %v276_v18 = vmul.f32 %v314_v9, %v266_v16 }
 0x381   :  { %v370_v19 = vpop.eup %369 }
 0x382   :  { %294 = vst.msk [vmem:[%s492_s7] sm:$0xff] %vm43_vm0, %v291_v17  ;;  %v286_v21 = vadd.f32 %v315_v11, %v276_v18  ;;  %v267_v22 = vmul.f32 %v370_v19, %v243_v56 }
 0x384   :  { %v292_v23 = vadd.f32 %v289_v20, %v286_v21  ;;  %v277_v24 = vmul.f32 %v314_v9, %v267_v22 }
 0x386   :  { %295 = vst.msk [vmem:[%s492_s7 + $0x8] sm:$0xff] %vm43_vm0, %v292_v23  ;;  %v287_v26 = vadd.f32 %v315_v11, %v277_v24 }
 0x388   :  { %v293_v27 = vadd.f32 %v290_v25, %v287_v26 }
 0x38a   :  { %296 = vst.msk [vmem:[%s492_s7 + $0x10] sm:$0xff] %vm43_vm0, %v293_v27 }

// kernel: g2m_gnn_forward.7
= control target key start
LH: loop header
LB: loop body
LE: loop exit
PB: predicated region body
PF: predicated region fallthrough
CT: control target
= control target key end

     0   :  { %vm47_vm0 = vcmask 261120   ;;  %s508_s0 = inlined_call_operand.vmem [shape: f32[32,32], index: 0, kind: input, shape index: {}, may-alias: {0,5}]   ;;  %s509_s1 = inlined_call_operand.vmem [shape: bf16[32,32], index: 1, kind: input, shape index: {}]   ;;  %s510_s2 = inlined_call_operand.vmem [shape: bf16[32,32], index: 2, kind: input, shape index: {}]   ;;  %s511_s3 = inlined_call_operand.vmem [shape: f32[1,32], index: 3, kind: input, shape index: {}]   ;;  %s512_s4 = inlined_call_operand.vmem [shape: f32[1,32], index: 4, kind: input, shape index: {}]   ;;  %s513_s5 = inlined_call_operand.vmem [shape: f32[32,32], index: 5, kind: input, shape index: {}, may-alias: {0,5}]   ;;  %s514_s6 = inlined_call_operand.hbm [shape: f32[32,32], index: 6, kind: output, shape index: {}]  }
   0x1   :  { %v348_v0 = vld [vmem:[%s509_s1] sm:$0xff]   ;;  %v349_v1 = vld [vmem:[%s509_s1 + $0x8] sm:$0xff]   ;;  %v27_v4 = vld [vmem:[%s508_s0 + $0x10] sm:$0xff] }
   0x2   :  { %329 = vmatprep.subr.bf16.mxu0 %v348_v0  ;;  %v25_v2 = vld [vmem:[%s508_s0] sm:$0xff]  ;;  %v26_v3 = vld [vmem:[%s508_s0 + $0x8] sm:$0xff]  ;;  %v28_v6 = vld [vmem:[%s508_s0 + $0x18] sm:$0xff] }
   0x3   :  { %330 = vmatpush3.bf16.msra.mxu0 %v348_v0  ;;  %v29_v5 = vpack.c.bf16 %v26_v3, %v25_v2 }
   0x4   :  { %331 = vmatprep.subr.bf16.mxu0 %v349_v1 }
   0x5   :  { %11 = vsyncpa [#allocation3], 0  ;;  %333 = vmatprep.mubr.msk.bf16.mxu0 %vm47_vm0, %v29_v5  ;;  %v30_v7 = vpack.c.bf16 %v28_v6, %v27_v4  ;;  %v350_v8 = vld [vmem:[%s510_s2] sm:$0xff]   ;;  %v351_v9 = vld [vmem:[%s510_s2 + $0x8] sm:$0xff]   ;;  %s400_s20 = smov [#allocation2]  }
   0x6   :  { %337 = vmatprep.subr.bf16.mxu1 %v350_v8  ;;  %s296_s21 = sshll.u32 %s400_s20, 4  ;;  %s297_s21 = int_to_ptr.vmem [resolvable:$true] %s296_s21 }
   0x7   :  { %332 = vmatpush3.bf16.msra.mxu0 %v349_v1  ;;  %338 = vmatpush3.bf16.msra.mxu1 %v350_v8  ;;  %s376_s22 = scalar_lea.vmem %s297_s21, 512  ;;  %p381_p1 = scmp.lt.s32.totalorder %s297_s21, %s297_s21 }
   0x8   :  { %339 = vmatprep.subr.bf16.mxu1 %v351_v9  ;;  %p377_p0 = scmp.ne.s32.totalorder %s297_s21, %s376_s22  ;;  %p382_p2 = scmp.lt.s32.totalorder %s376_s22, %s376_s22 }
   0xa   :  { %334 = vmatmul.mubr.msk.bf16.vlgmr.msra.gmra.mrb[0].mxu0 %vm47_vm0, %v30_v7  ;;  %p383_p3 = por %p382_p2, %p381_p1 }
   0xb   :  { %340 = vmatpush3.bf16.msra.mxu1 %v351_v9 }
   0xc   :  { %p384_p4 = pnand %p383_p3, %p377_p0 }
  0xdd   :  { %v335_v10 = vpop.f32.mrb[0].mxu0 }
  0xde   :  { %v313_v11 = vmul.f32 -1.442695, %v335_v10  ;;  %v88_v12 = vpop.f32.mrb[1].mxu0 }
  0xdf   :  { %v311_v13 = vmul.f32 -1.442695, %v88_v12  ;;  %v336_v14 = vpop.f32.mrb[2].mxu0 }
  0xe0   :  { %352 = vpow2.f32 %v313_v11  ;;  %v314_v15 = vmul.f32 -1.442695, %v336_v14  ;;  %v91_v16 = vpop.f32.mrb[3].mxu0 }
  0xe1   :  { %354 = vpow2.f32 %v311_v13  ;;  %v312_v17 = vmul.f32 -1.442695, %v91_v16  ;;  %v319_v13 = vld [vmem:[%s511_s3] ss:$0 sm:$0xff] }
  0xe2   :  { %356 = vpow2.f32 %v314_v15  ;;  %v320_v15 = vld [vmem:[%s512_s4] ss:$0 sm:$0xff] }
  0xe3   :  { %358 = vpow2.f32 %v312_v17 }
  0xea   :  { %v353_v18 = vpop.eup %352 }
  0xeb   :  { %v355_v19 = vpop.eup %354  ;;  %v117_v20 = vadd.f32 1.0, %v353_v18  ;;  %v279_v18 = vld [vmem:[%s513_s5] sm:$0xff] }
  0xec   :  { %v357_v21 = vpop.eup %356  ;;  %v115_v22 = vadd.f32 1.0, %v355_v19 }
  0xed   :  { %v359_v23 = vpop.eup %358  ;;  %360 = vrcp.f32 %v117_v20  ;;  %v118_v24 = vadd.f32 1.0, %v357_v21 }
  0xee   :  { %362 = vrcp.f32 %v115_v22  ;;  %v116_v25 = vadd.f32 1.0, %v359_v23 }
  0xef   :  { %364 = vrcp.f32 %v118_v24 }
  0xf0   :  { %366 = vrcp.f32 %v116_v25 }
  0xf7   :  { %v361_v26 = vpop.eup %360 }
  0xf8   :  { %v363_v27 = vpop.eup %362  ;;  %v129_v30 = vmul.f32 %v361_v26, %v335_v10 }
  0xf9   :  { %v365_v28 = vpop.eup %364  ;;  %v127_v32 = vmul.f32 %v363_v27, %v88_v12  ;;  %v280_v27 = vld [vmem:[%s513_s5 + $0x8] sm:$0xff] }
  0xfa   :  { %v367_v29 = vpop.eup %366  ;;  %v130_v31 = vmul.f32 %v365_v28, %v336_v14 }
  0xfb   :  { %v128_v33 = vmul.f32 %v367_v29, %v91_v16 }
  0xfc   :  { %v132_v34 = vpack.c.bf16 %v130_v31, %v129_v30  ;;  %v281_v30 = vld [vmem:[%s513_s5 + $0x10] sm:$0xff] }
  0xfd   :  { %v131_v35 = vpack.c.bf16 %v128_v33, %v127_v32 }
  0xff   :  { %341 = vmatprep.mubr.msk.bf16.mxu1 %vm47_vm0, %v131_v35 }
 0x100   :  { %342 = vmatmul.mubr.msk.bf16.vlgmr.msra.gmra.mrb[0].mxu1 %vm47_vm0, %v132_v34  ;;  %v282_v34 = vld [vmem:[%s513_s5 + $0x18] sm:$0xff] }
 0x1d3   :  { %v343_v36 = vpop.f32.mrb[0].mxu1 }
 0x1d4   :  { %v189_v37 = vpop.f32.mrb[1].mxu1  ;;  %v210_v38 = vsel %vm47_vm0, %v343_v36, 0.0 }
 0x1d5   :  { %211 = vadd.xlane.f32.xlu1 %v210_v38  ;;  %v344_v39 = vpop.f32.mrb[2].mxu1  ;;  %v204_v40 = vsel %vm47_vm0, %v189_v37, 0.0 }
 0x1d6   :  { %205 = vadd.xlane.f32.xlu0 %v204_v40  ;;  %v192_v41 = vpop.f32.mrb[3].mxu1  ;;  %v213_v42 = vsel %vm47_vm0, %v344_v39, 0.0 }
 0x1d7   :  { %v207_v43 = vsel %vm47_vm0, %v192_v41, 0.0 }
 0x1d9   :  { %214 = vadd.xlane.f32.xlu1 %v213_v42 }
 0x1da   :  { %208 = vadd.xlane.f32.xlu0 %v207_v43 }
 0x262   :  { %v212_v44 = vpop.xlane.xlu1 %211 }
 0x263   :  { %v219_v45 = vmul.f32 0.03125, %v212_v44  ;;  %v206_v46 = vpop.xlane.xlu0 %205 }
 0x264   :  { %v217_v47 = vmul.f32 0.03125, %v206_v46 }
 0x265   :  { %v223_v48 = vsub.f32 %v343_v36, %v219_v45 }
 0x266   :  { %v221_v49 = vsub.f32 %v189_v37, %v217_v47  ;;  %v215_v50 = vpop.xlane.xlu1 %214 }
 0x267   :  { %v220_v51 = vmul.f32 0.03125, %v215_v50  ;;  %v209_v52 = vpop.xlane.xlu0 %208  ;;  %v227_v58 = vmul.f32 %v223_v48, %v223_v48 }
 0x268   :  { %v218_v53 = vmul.f32 0.03125, %v209_v52  ;;  %v225_v54 = vmul.f32 %v221_v49, %v221_v49 }
 0x269   :  { %v224_v55 = vsub.f32 %v344_v39, %v220_v51  ;;  %v235_v60 = vsel %vm47_vm0, %v227_v58, 0.0 }
 0x26a   :  { %v222_v56 = vsub.f32 %v192_v41, %v218_v53  ;;  %v229_v57 = vsel %vm47_vm0, %v225_v54, 0.0 }
 0x26b   :  { %230 = vadd.xlane.f32.xlu0 %v229_v57  ;;  %v228_v62 = vmul.f32 %v224_v55, %v224_v55 }
 0x26c   :  { %v226_v59 = vmul.f32 %v222_v56, %v222_v56 }
 0x26d   :  { %v238_v63 = vsel %vm47_vm0, %v228_v62, 0.0 }
 0x26e   :  { %v232_v61 = vsel %vm47_vm0, %v226_v59, 0.0 }
 0x26f   :  { %236 = vadd.xlane.f32.xlu0 %v235_v60  ;;  %233 = vadd.xlane.f32.xlu1 %v232_v61 }
 0x273   :  { %239 = vadd.xlane.f32.xlu1 %v238_v63 }
 0x2f8   :  { %v231_v0 = vpop.xlane.xlu0 %230 }
 0x2f9   :  { %v241_v1 = vmul.f32 0.03125, %v231_v0 }
 0x2fb   :  { %v245_v2 = vadd.f32 1e-05, %v241_v1 }
 0x2fc   :  { %v234_v3 = vpop.xlane.xlu1 %233  ;;  %v237_v4 = vpop.xlane.xlu0 %236 }
 0x2fd   :  { %368 = vrsqrt.f32 %v245_v2  ;;  %v242_v5 = vmul.f32 0.03125, %v234_v3  ;;  %v243_v6 = vmul.f32 0.03125, %v237_v4 }
 0x2ff   :  { %v246_v7 = vadd.f32 1e-05, %v242_v5  ;;  %v247_v8 = vadd.f32 1e-05, %v243_v6 }
 0x300   :  { %v240_v9 = vpop.xlane.xlu1 %239 }
 0x301   :  { %370 = vrsqrt.f32 %v246_v7  ;;  %v244_v10 = vmul.f32 0.03125, %v240_v9 }
 0x302   :  { %372 = vrsqrt.f32 %v247_v8 }
 0x303   :  { %v248_v11 = vadd.f32 1e-05, %v244_v10 }
 0x305   :  { %374 = vrsqrt.f32 %v248_v11 }
 0x307   :  { %v369_v12 = vpop.eup %368 }
 0x308   :  { %v253_v14 = vmul.f32 %v369_v12, %v221_v49 }
 0x30a   :  { %v264_v16 = vmul.f32 %v319_v13, %v253_v14 }
 0x30b   :  { %v371_v17 = vpop.eup %370 }
 0x30c   :  { %v373_v19 = vpop.eup %372  ;;  %v275_v20 = vadd.f32 %v320_v15, %v264_v16  ;;  %v254_v21 = vmul.f32 %v371_v17, %v222_v56 }
 0x30d   :  { %v255_v22 = vmul.f32 %v373_v19, %v223_v48 }
 0x30e   :  { %v265_v23 = vmul.f32 %v319_v13, %v254_v21  ;;  %v283_v24 = vadd.f32 %v279_v18, %v275_v20 }
 0x30f   :  { %v375_v25 = vpop.eup %374  ;;  %v266_v26 = vmul.f32 %v319_v13, %v255_v22 }
 0x310   :  { %v276_v28 = vadd.f32 %v320_v15, %v265_v23  ;;  %v256_v29 = vmul.f32 %v375_v25, %v224_v55  ;;  %287 = vst.msk [vmem:[#allocation2] sm:$0xff] %vm47_vm0, %v283_v24 }
 0x311   :  { %v277_v31 = vadd.f32 %v320_v15, %v266_v26 }
 0x312   :  { %v267_v32 = vmul.f32 %v319_v13, %v256_v29  ;;  %v284_v33 = vadd.f32 %v280_v27, %v276_v28 }
 0x313   :  { %v285_v35 = vadd.f32 %v281_v30, %v277_v31 }
 0x314   :  { %v278_v36 = vadd.f32 %v320_v15, %v267_v32  ;;  %288 = vst.msk [vmem:[#allocation2 + $0x8] sm:$0xff] %vm47_vm0, %v284_v33 }
 0x315   :  { %289 = vst.msk [vmem:[#allocation2 + $0x10] sm:$0xff] %vm47_vm0, %v285_v35 }
 0x316   :  { %v286_v37 = vadd.f32 %v282_v34, %v278_v36 }
 0x318   :  { %290 = vst.msk [vmem:[#allocation2 + $0x18] sm:$0xff] %vm47_vm0, %v286_v37 }
 0x319   :  { %387 = shalt.err (!%p384_p4)
}
 0x31a   :  { %s388_s24 = scalar_lea.hbm %s514_s6, 512 }
 0x31b   :  { %p389_p5 = scmp.ne.s32.totalorder %s514_s6, %s388_s24  ;;  %p392_p6 = scmp.lt.u32.totalorder %s388_s24, %s514_s6 }
 0x31d   :  { %p394_p7 = pnand %p392_p6, %p389_p5 }
 0x31f   :  { %397 = shalt.err (!%p394_p7)
}
 0x320   :  { %s401_s29 = smov 128   ;;  %s402_s30 = smov 8  }
 0x321   :  { %302 = dma.vmem_to_hbm [thread:$0]  %s297_s21, 512, %s514_s6, [#allocation3], %s401_s29, %s401_s29, %s402_s30  }
 0x322   :  { %398 = dma.done.wait [#allocation3], 512  }
 0x323   :  { %399 = vsyncadd [#allocation3], 4294966784 }
 0x324   :  { %306 = vsyncpa [#allocation3], 1 }

// kernel: g2m_gnn_forward.4
= control target key start
LH: loop header
LB: loop body
LE: loop exit
PB: predicated region body
PF: predicated region fallthrough
CT: control target
= control target key end

     0   :  { %v622_v7 = vmov 0.0   ;;  %vm623_vm0 = vmmov 0   ;;  %s624_s21 = smov 32   ;;  %s853_s0 = inlined_call_operand.vmem [shape: f32[48,32], index: 0, kind: input, shape index: {}]   ;;  %s854_s1 = inlined_call_operand.vmem [shape: f32[48,32], index: 1, kind: input, shape index: {}]   ;;  %s855_s2 = inlined_call_operand.vmem [shape: f32[48,32], index: 2, kind: input, shape index: {}, may-alias: {2,7}]   ;;  %s856_s3 = inlined_call_operand.vmem [shape: bf16[96,32], index: 3, kind: input, shape index: {}]   ;;  %s857_s4 = inlined_call_operand.vmem [shape: bf16[32,32], index: 4, kind: input, shape index: {}]   ;;  %s858_s5 = inlined_call_operand.vmem [shape: f32[1,32], index: 5, kind: input, shape index: {}]   ;;  %s859_s6 = inlined_call_operand.vmem [shape: f32[1,32], index: 6, kind: input, shape index: {}]   ;;  %s860_s7 = inlined_call_operand.vmem [shape: f32[48,32], index: 7, kind: input, shape index: {}, may-alias: {2,7}]   ;;  %s861_s8 = inlined_call_operand.hbm [shape: f32[48,32], index: 8, kind: output, shape index: {}]  }
   0x1   :  { %v40_v0 = vld [vmem:[%s854_s1] sm:$0xff]  ;;  %v41_v1 = vld [vmem:[%s854_s1 + $0x8] sm:$0xff]  ;;  %v42_v5 = vld [vmem:[%s854_s1 + $0x10] sm:$0xff]  ;;  %507 = vmatprep.subr.bf16.mxu0 %v622_v7  ;;  %531 = vmatprep.subr.bf16.mxu1 %v622_v7 }
   0x2   :  { %v49_v2 = vld [vmem:[%s855_s2] sm:$0xff]  ;;  %v46_v3 = vpack.c.bf16 %v41_v1, %v40_v0  ;;  %v50_v4 = vld [vmem:[%s855_s2 + $0x8] sm:$0xff]  ;;  %v43_v6 = vld [vmem:[%s854_s1 + $0x18] sm:$0xff]  ;;  %519 = vmatprep.mubr.msk.bf16.mxu0 %vm623_vm0, %v622_v7  ;;  %535 = vmatprep.mubr.msk.bf16.mxu1 %vm623_vm0, %v622_v7 }
   0x3   :  { %v47_v8 = vpack.c.bf16 %v43_v6, %v42_v5  ;;  %v51_v9 = vld [vmem:[%s855_s2 + $0x10] sm:$0xff]  ;;  %v52_v10 = vld [vmem:[%s855_s2 + $0x18] sm:$0xff]  ;;  %v55_v11 = vpack.c.bf16 %v50_v4, %v49_v2  ;;  %v44_v12 = vld [vmem:[%s854_s1 + $0x20] sm:$0xff] }
   0x4   :  { %61 = vrot.lane.b32.xlu0 %v46_v3, %s624_s21  ;;  %v45_v13 = vld [vmem:[%s854_s1 + $0x28] sm:$0xff]  ;;  %v53_v14 = vld [vmem:[%s855_s2 + $0x20] sm:$0xff]  ;;  %v56_v15 = vpack.c.bf16 %v52_v10, %v51_v9  ;;  %s625_s1 = smov 64   ;;  %v556_v21 = vld [vmem:[%s856_s3 + $0x10] sm:$0xff]  }
   0x5   :  { %63 = vrot.lane.b32.xlu1 %v47_v8, %s624_s21  ;;  %v554_v16 = vld [vmem:[%s856_s3] sm:$0xff]   ;;  %v54_v17 = vld [vmem:[%s855_s2 + $0x28] sm:$0xff]  ;;  %v48_v19 = vpack.c.bf16 %v45_v13, %v44_v12 }
   0x6   :  { %508 = vmatpush3.bf16.msra.mxu0 %v554_v16  ;;  %v555_v18 = vld [vmem:[%s856_s3 + $0x8] sm:$0xff]   ;;  %v57_v20 = vpack.c.bf16 %v54_v17, %v53_v14 }
   0x7   :  { %509 = vmatprep.subr.bf16.mxu0 %v622_v7 }
   0x8   :  { %70 = vrot.lane.b32.xlu0 %v55_v11, %s625_s1 }
   0x9   :  { %72 = vrot.lane.b32.xlu1 %v56_v15, %s625_s1 }
   0xa   :  { %510 = vmatpush3.bf16.msra.mxu0 %v555_v18 }
   0xb   :  { %511 = vmatprep.subr.bf16.mxu0 %v622_v7 }
   0xc   :  { %65 = vrot.lane.b32.xlu0 %v48_v19, %s624_s21 }
   0xd   :  { %74 = vrot.lane.b32.xlu1 %v57_v20, %s625_s1 }
   0xe   :  { %13 = vsyncpa [#allocation3], 0  ;;  %512 = vmatpush3.bf16.msra.mxu0 %v556_v21  ;;  %v557_v22 = vld [vmem:[%s856_s3 + $0x18] sm:$0xff]   ;;  %v558_v23 = vld [vmem:[%s856_s3 + $0x20] sm:$0xff]   ;;  %vm76_vm1 = vcmask 261120   ;;  %vm86_vm2 = vcmask 523264  }
   0xf   :  { %513 = vmatprep.subr.bf16.mxu0 %v622_v7  ;;  %v559_v24 = vld [vmem:[%s856_s3 + $0x28] sm:$0xff]   ;;  %v31_v25 = vld [vmem:[%s853_s0] sm:$0xff]  ;;  %v33_v29 = vld [vmem:[%s853_s0 + $0x10] sm:$0xff]  ;;  %vm141_vm3 = vcmask 785408   ;;  %s626_s20 = smov [#allocation2]  }
  0x10   :  { %v32_v26 = vld [vmem:[%s853_s0 + $0x8] sm:$0xff]  ;;  %v34_v30 = vld [vmem:[%s853_s0 + $0x18] sm:$0xff]  ;;  %v35_v36 = vld [vmem:[%s853_s0 + $0x20] sm:$0xff]  ;;  %s460_s21 = sshll.u32 %s626_s20, 4  ;;  %s461_s21 = int_to_ptr.vmem [resolvable:$true] %s460_s21 }
  0x11   :  { %v37_v28 = vpack.c.bf16 %v32_v26, %v31_v25  ;;  %v38_v35 = vpack.c.bf16 %v34_v30, %v33_v29  ;;  %v36_v37 = vld [vmem:[%s853_s0 + $0x28] sm:$0xff]  ;;  %v560_v46 = vld [vmem:[%s857_s4] sm:$0xff]   ;;  %s598_s24 = scalar_lea.vmem %s461_s21, 768  ;;  %p603_p1 = scmp.lt.s32.totalorder %s461_s21, %s461_s21 }
  0x12   :  { %514 = vmatpush3.bf16.msra.mxu0 %v557_v22  ;;  %v39_v40 = vpack.c.bf16 %v36_v37, %v35_v36  ;;  %532 = vmatpush3.bf16.msra.mxu1 %v560_v46  ;;  %v561_v47 = vld [vmem:[%s857_s4 + $0x8] sm:$0xff]   ;;  %p599_p0 = scmp.ne.s32.totalorder %s461_s21, %s598_s24  ;;  %p604_p2 = scmp.lt.s32.totalorder %s598_s24, %s598_s24 }
  0x13   :  { %515 = vmatprep.subr.bf16.mxu0 %v622_v7  ;;  %533 = vmatprep.subr.bf16.mxu1 %v622_v7 }
  0x14   :  { %p605_p3 = por %p604_p2, %p603_p1 }
  0x16   :  { %516 = vmatpush3.bf16.msra.mxu0 %v558_v23  ;;  %534 = vmatpush3.bf16.msra.mxu1 %v561_v47  ;;  %p606_p4 = pnand %p605_p3, %p599_p0 }
  0x17   :  { %517 = vmatprep.subr.bf16.mxu0 %v622_v7 }
  0x1a   :  { %518 = vmatpush3.bf16.msra.mxu0 %v559_v24 }
  0x76   :  { %v62_v27 = vpop.permute.xlu0 %61 }
  0x77   :  { %v79_v31 = vsel %vm76_vm1, %v37_v28, %v62_v27  ;;  %v64_v33 = vpop.permute.xlu1 %63 }
  0x78   :  { %v82_v38 = vsel %vm76_vm1, %v38_v35, %v64_v33 }
  0x7a   :  { %v71_v32 = vpop.permute.xlu0 %70 }
  0x7b   :  { %v88_v34 = vsel %vm86_vm2, %v79_v31, %v71_v32  ;;  %v73_v39 = vpop.permute.xlu1 %72 }
  0x7c   :  { %520 = vmatmul.mubr.msk.bf16.vlgmr.msra.gmra.mrb[0].mxu0 %vm141_vm3, %v88_v34  ;;  %v90_v41 = vsel %vm86_vm2, %v82_v38, %v73_v39 }
  0x7d   :  { %523 = vmatprep.mubr.msk.bf16.mxu0 %vm623_vm0, %v622_v7 }
  0x7e   :  { %v66_v42 = vpop.permute.xlu0 %65 }
  0x7f   :  { %v85_v43 = vsel %vm76_vm1, %v39_v40, %v66_v42  ;;  %v75_v44 = vpop.permute.xlu1 %74 }
  0x80   :  { %v92_v45 = vsel %vm86_vm2, %v85_v43, %v75_v44 }
  0x84   :  { %524 = vmatmul.mubr.msk.bf16.gmra.mrb[4].mxu0 %vm141_vm3, %v90_v41 }
  0x85   :  { %527 = vmatprep.mubr.msk.bf16.mxu0 %vm623_vm0, %v622_v7 }
  0x8c   :  { %528 = vmatmul.mubr.msk.bf16.gmra.mrb[8].mxu0 %vm141_vm3, %v92_v45 }
 0x14f   :  { %v182_v48 = vpop.f32.mrb[0].mxu0 }
 0x150   :  { %v480_v49 = vmul.f32 -1.442695, %v182_v48  ;;  %v521_v50 = vpop.f32.mrb[1].mxu0 }
 0x151   :  { %v185_v51 = vpop.f32.mrb[2].mxu0 }
 0x152   :  { %562 = vpow2.f32 %v480_v49  ;;  %v481_v52 = vmul.f32 -1.442695, %v185_v51  ;;  %v522_v53 = vpop.f32.mrb[3].mxu0 }
 0x154   :  { %564 = vpow2.f32 %v481_v52 }
 0x157   :  { %v190_v54 = vpop.f32.mrb[4].mxu0 }
 0x158   :  { %v482_v55 = vmul.f32 -1.442695, %v190_v54  ;;  %v525_v56 = vpop.f32.mrb[5].mxu0 }
 0x159   :  { %v193_v57 = vpop.f32.mrb[6].mxu0 }
 0x15a   :  { %566 = vpow2.f32 %v482_v55  ;;  %v483_v58 = vmul.f32 -1.442695, %v193_v57  ;;  %v526_v59 = vpop.f32.mrb[7].mxu0 }
 0x15c   :  { %v563_v60 = vpop.eup %562  ;;  %568 = vpow2.f32 %v483_v58 }
 0x15d   :  { %v223_v61 = vadd.f32 1.0, %v563_v60 }
 0x15e   :  { %v565_v62 = vpop.eup %564 }
 0x15f   :  { %570 = vrcp.f32 %v223_v61  ;;  %v224_v63 = vadd.f32 1.0, %v565_v62  ;;  %v198_v0 = vpop.f32.mrb[8].mxu0 }
 0x160   :  { %v484_v1 = vmul.f32 -1.442695, %v198_v0  ;;  %v529_v2 = vpop.f32.mrb[9].mxu0 }
 0x161   :  { %572 = vrcp.f32 %v224_v63  ;;  %v201_v3 = vpop.f32.mrb[10].mxu0 }
 0x162   :  { %574 = vpow2.f32 %v484_v1  ;;  %v485_v4 = vmul.f32 -1.442695, %v201_v3  ;;  %v530_v5 = vpop.f32.mrb[11].mxu0 }
 0x164   :  { %v567_v6 = vpop.eup %566  ;;  %576 = vpow2.f32 %v485_v4 }
 0x165   :  { %v225_v8 = vadd.f32 1.0, %v567_v6 }
 0x166   :  { %v569_v9 = vpop.eup %568 }
 0x167   :  { %578 = vrcp.f32 %v225_v8  ;;  %v226_v10 = vadd.f32 1.0, %v569_v9 }
 0x169   :  { %v571_v11 = vpop.eup %570  ;;  %580 = vrcp.f32 %v226_v10 }
 0x16a   :  { %v241_v14 = vmul.f32 %v571_v11, %v182_v48 }
 0x16b   :  { %v573_v12 = vpop.eup %572 }
 0x16c   :  { %v575_v13 = vpop.eup %574  ;;  %v242_v15 = vmul.f32 %v573_v12, %v185_v51 }
 0x16d   :  { %v227_v16 = vadd.f32 1.0, %v575_v13 }
 0x16e   :  { %v577_v17 = vpop.eup %576  ;;  %v247_v18 = vpack.c.bf16 %v242_v15, %v241_v14 }
 0x16f   :  { %582 = vrcp.f32 %v227_v16  ;;  %v228_v19 = vadd.f32 1.0, %v577_v17 }
 0x170   :  { %536 = vmatmul.mubr.msk.bf16.vlgmr.msra.gmra.mrb[0].mxu1 %vm76_vm1, %v247_v18 }
 0x171   :  { %v579_v20 = vpop.eup %578  ;;  %584 = vrcp.f32 %v228_v19  ;;  %539 = vmatprep.mubr.msk.bf16.mxu1 %vm623_vm0, %v622_v7 }
 0x172   :  { %v243_v22 = vmul.f32 %v579_v20, %v190_v54 }
 0x173   :  { %v581_v21 = vpop.eup %580 }
 0x174   :  { %v244_v23 = vmul.f32 %v581_v21, %v193_v57 }
 0x176   :  { %v248_v24 = vpack.c.bf16 %v244_v23, %v243_v22 }
 0x178   :  { %540 = vmatmul.mubr.msk.bf16.gmra.mrb[4].mxu1 %vm76_vm1, %v248_v24 }
 0x179   :  { %v583_v25 = vpop.eup %582  ;;  %543 = vmatprep.mubr.msk.bf16.mxu1 %vm623_vm0, %v622_v7 }
 0x17a   :  { %v245_v27 = vmul.f32 %v583_v25, %v198_v0 }
 0x17b   :  { %v585_v26 = vpop.eup %584 }
 0x17c   :  { %v246_v28 = vmul.f32 %v585_v26, %v201_v3  ;;  %v491_v26 = vld [vmem:[%s858_s5] ss:$0 sm:$0xff] }
 0x17e   :  { %v249_v29 = vpack.c.bf16 %v246_v28, %v245_v27 }
 0x180   :  { %544 = vmatmul.mubr.msk.bf16.gmra.mrb[8].mxu1 %vm76_vm1, %v249_v29 }
 0x243   :  { %v309_v30 = vpop.f32.mrb[0].mxu1 }
 0x244   :  { %v537_v31 = vpop.f32.mrb[1].mxu1  ;;  %v332_v32 = vsel %vm76_vm1, %v309_v30, 0.0 }
 0x245   :  { %333 = vadd.xlane.f32.xlu0 %v332_v32  ;;  %v312_v33 = vpop.f32.mrb[2].mxu1  ;;  %v492_v31 = vld [vmem:[%s859_s6] ss:$0 sm:$0xff] }
 0x246   :  { %v538_v34 = vpop.f32.mrb[3].mxu1  ;;  %v335_v35 = vsel %vm76_vm1, %v312_v33, 0.0 }
 0x247   :  { %336 = vadd.xlane.f32.xlu1 %v335_v35 }
 0x24b   :  { %v317_v36 = vpop.f32.mrb[4].mxu1 }
 0x24c   :  { %v541_v37 = vpop.f32.mrb[5].mxu1  ;;  %v338_v7 = vsel %vm76_vm1, %v317_v36, 0.0 }
 0x24d   :  { %339 = vadd.xlane.f32.xlu0 %v338_v7  ;;  %v320_v38 = vpop.f32.mrb[6].mxu1 }
 0x24e   :  { %v542_v39 = vpop.f32.mrb[7].mxu1  ;;  %v341_v40 = vsel %vm76_vm1, %v320_v38, 0.0 }
 0x251   :  { %342 = vadd.xlane.f32.xlu0 %v341_v40  ;;  %v438_v40 = vld [vmem:[%s860_s7 + $0x8] sm:$0xff] }
 0x253   :  { %v325_v41 = vpop.f32.mrb[8].mxu1 }
 0x254   :  { %v545_v42 = vpop.f32.mrb[9].mxu1  ;;  %v344_v43 = vsel %vm76_vm1, %v325_v41, 0.0 }
 0x255   :  { %345 = vadd.xlane.f32.xlu1 %v344_v43  ;;  %v328_v44 = vpop.f32.mrb[10].mxu1 }
 0x256   :  { %v546_v45 = vpop.f32.mrb[11].mxu1  ;;  %v347_v46 = vsel %vm76_vm1, %v328_v44, 0.0 }
 0x257   :  { %348 = vadd.xlane.f32.xlu0 %v347_v46 }
 0x2d2   :  { %v334_v47 = vpop.xlane.xlu0 %333 }
 0x2d3   :  { %v351_v48 = vmul.f32 0.03125, %v334_v47 }
 0x2d4   :  { %v337_v49 = vpop.xlane.xlu1 %336 }
 0x2d5   :  { %v357_v50 = vsub.f32 %v309_v30, %v351_v48  ;;  %v352_v51 = vmul.f32 0.03125, %v337_v49  ;;  %v439_v49 = vld [vmem:[%s860_s7 + $0x10] sm:$0xff] }
 0x2d7   :  { %v358_v52 = vsub.f32 %v312_v33, %v352_v51  ;;  %v363_v53 = vmul.f32 %v357_v50, %v357_v50 }
 0x2d9   :  { %v369_v54 = vsel %vm76_vm1, %v363_v53, 0.0  ;;  %v364_v55 = vmul.f32 %v358_v52, %v358_v52 }
 0x2da   :  { %v340_v56 = vpop.xlane.xlu0 %339  ;;  %370 = vadd.xlane.f32.xlu1 %v369_v54 }
 0x2db   :  { %v353_v57 = vmul.f32 0.03125, %v340_v56  ;;  %v372_v58 = vsel %vm76_vm1, %v364_v55, 0.0  ;;  %v440_v55 = vld [vmem:[%s860_s7 + $0x18] sm:$0xff] }
 0x2dc   :  { %373 = vadd.xlane.f32.xlu0 %v372_v58 }
 0x2dd   :  { %v359_v59 = vsub.f32 %v317_v36, %v353_v57  ;;  %v437_v36 = vld [vmem:[%s860_s7] sm:$0xff] }
 0x2de   :  { %v343_v60 = vpop.xlane.xlu0 %342 }
 0x2df   :  { %v354_v61 = vmul.f32 0.03125, %v343_v60  ;;  %v365_v62 = vmul.f32 %v359_v59, %v359_v59 }
 0x2e1   :  { %v792_v63 = vsub.f32 %v320_v38, %v354_v61  ;;  %v375_v0 = vsel %vm76_vm1, %v365_v62, 0.0  ;;  %v441_v62 = vld [vmem:[%s860_s7 + $0x20] sm:$0xff] }
 0x2e2   :  { %376 = vadd.xlane.f32.xlu1 %v375_v0  ;;  %v346_v1 = vpop.xlane.xlu1 %345 }
 0x2e3   :  { %v355_v2 = vmul.f32 0.03125, %v346_v1  ;;  %v366_v3 = vmul.f32 %v792_v63, %v792_v63  ;;  %v442_v1 = vld [vmem:[%s860_s7 + $0x28] sm:$0xff] }
 0x2e4   :  { %v349_v4 = vpop.xlane.xlu0 %348 }
 0x2e5   :  { %v797_v5 = vsub.f32 %v325_v41, %v355_v2  ;;  %v356_v6 = vmul.f32 0.03125, %v349_v4  ;;  %v378_v8 = vsel %vm76_vm1, %v366_v3, 0.0 }
 0x2e6   :  { %379 = vadd.xlane.f32.xlu0 %v378_v8 }
 0x2e7   :  { %v800_v9 = vsub.f32 %v328_v44, %v356_v6  ;;  %v367_v10 = vmul.f32 %v797_v5, %v797_v5 }
 0x2e9   :  { %v381_v11 = vsel %vm76_vm1, %v367_v10, 0.0  ;;  %v368_v12 = vmul.f32 %v800_v9, %v800_v9 }
 0x2ea   :  { %382 = vadd.xlane.f32.xlu1 %v381_v11 }
 0x2eb   :  { %v384_v13 = vsel %vm76_vm1, %v368_v12, 0.0 }
 0x2ec   :  { %385 = vadd.xlane.f32.xlu0 %v384_v13 }
 0x367   :  { %v371_v14 = vpop.xlane.xlu1 %370 }
 0x368   :  { %v387_v15 = vmul.f32 0.03125, %v371_v14 }
 0x369   :  { %v374_v16 = vpop.xlane.xlu0 %373 }
 0x36a   :  { %v393_v17 = vadd.f32 1e-05, %v387_v15  ;;  %v388_v18 = vmul.f32 0.03125, %v374_v16 }
 0x36c   :  { %586 = vrsqrt.f32 %v393_v17  ;;  %v394_v19 = vadd.f32 1e-05, %v388_v18 }
 0x36e   :  { %588 = vrsqrt.f32 %v394_v19 }
 0x36f   :  { %v377_v20 = vpop.xlane.xlu1 %376 }
 0x370   :  { %v389_v21 = vmul.f32 0.03125, %v377_v20 }
 0x372   :  { %v395_v22 = vadd.f32 1e-05, %v389_v21 }
 0x373   :  { %v380_v23 = vpop.xlane.xlu0 %379 }
 0x374   :  { %590 = vrsqrt.f32 %v395_v22  ;;  %v390_v24 = vmul.f32 0.03125, %v380_v23 }
 0x376   :  { %v587_v25 = vpop.eup %586  ;;  %v396_v27 = vadd.f32 1e-05, %v390_v24 }
 0x377   :  { %v405_v28 = vmul.f32 %v587_v25, %v357_v50  ;;  %v383_v29 = vpop.xlane.xlu1 %382 }
 0x378   :  { %v589_v30 = vpop.eup %588  ;;  %592 = vrsqrt.f32 %v396_v27  ;;  %v391_v32 = vmul.f32 0.03125, %v383_v29 }
 0x379   :  { %v418_v33 = vmul.f32 %v491_v26, %v405_v28  ;;  %v406_v34 = vmul.f32 %v589_v30, %v358_v52  ;;  %v386_v35 = vpop.xlane.xlu0 %385 }
 0x37a   :  { %v397_v37 = vadd.f32 1e-05, %v391_v32  ;;  %v392_v7 = vmul.f32 0.03125, %v386_v35 }
 0x37b   :  { %v431_v38 = vadd.f32 %v492_v31, %v418_v33  ;;  %v419_v39 = vmul.f32 %v491_v26, %v406_v34 }
 0x37c   :  { %594 = vrsqrt.f32 %v397_v37  ;;  %v398_v41 = vadd.f32 1e-05, %v392_v7 }
 0x37d   :  { %v443_v42 = vadd.f32 %v437_v36, %v431_v38  ;;  %v432_v43 = vadd.f32 %v492_v31, %v419_v39 }
 0x37e   :  { %v591_v44 = vpop.eup %590  ;;  %596 = vrsqrt.f32 %v398_v41 }
 0x37f   :  { %449 = vst.msk [vmem:[#allocation2] sm:$0xff] %vm76_vm1, %v443_v42  ;;  %v444_v45 = vadd.f32 %v438_v40, %v432_v43  ;;  %v407_v46 = vmul.f32 %v591_v44, %v359_v59 }
 0x381   :  { %450 = vst.msk [vmem:[#allocation2 + $0x8] sm:$0xff] %vm76_vm1, %v444_v45  ;;  %v420_v47 = vmul.f32 %v491_v26, %v407_v46 }
 0x382   :  { %v593_v48 = vpop.eup %592 }
 0x383   :  { %v433_v50 = vadd.f32 %v492_v31, %v420_v47  ;;  %v408_v51 = vmul.f32 %v593_v48, %v792_v63 }
 0x385   :  { %v445_v52 = vadd.f32 %v439_v49, %v433_v50  ;;  %v421_v53 = vmul.f32 %v491_v26, %v408_v51 }
 0x386   :  { %v595_v54 = vpop.eup %594 }
 0x387   :  { %451 = vst.msk [vmem:[#allocation2 + $0x10] sm:$0xff] %vm76_vm1, %v445_v52  ;;  %v434_v56 = vadd.f32 %v492_v31, %v421_v53  ;;  %v409_v57 = vmul.f32 %v595_v54, %v797_v5 }
 0x388   :  { %v597_v58 = vpop.eup %596 }
 0x389   :  { %v446_v59 = vadd.f32 %v440_v55, %v434_v56  ;;  %v422_v60 = vmul.f32 %v491_v26, %v409_v57  ;;  %v410_v61 = vmul.f32 %v597_v58, %v800_v9 }
 0x38b   :  { %452 = vst.msk [vmem:[#allocation2 + $0x18] sm:$0xff] %vm76_vm1, %v446_v59  ;;  %v435_v63 = vadd.f32 %v492_v31, %v422_v60  ;;  %v423_v0 = vmul.f32 %v491_v26, %v410_v61 }
 0x38d   :  { %v447_v2 = vadd.f32 %v441_v62, %v435_v63  ;;  %v436_v3 = vadd.f32 %v492_v31, %v423_v0 }
 0x38f   :  { %453 = vst.msk [vmem:[#allocation2 + $0x20] sm:$0xff] %vm76_vm1, %v447_v2  ;;  %v448_v4 = vadd.f32 %v442_v1, %v436_v3 }
 0x391   :  { %454 = vst.msk [vmem:[#allocation2 + $0x28] sm:$0xff] %vm76_vm1, %v448_v4 }
 0x392   :  { %609 = shalt.err (!%p606_p4)
}
 0x393   :  { %s610_s26 = scalar_lea.hbm %s861_s8, 768 }
 0x394   :  { %p611_p5 = scmp.ne.s32.totalorder %s861_s8, %s610_s26  ;;  %p614_p6 = scmp.lt.u32.totalorder %s610_s26, %s861_s8 }
 0x396   :  { %p616_p7 = pnand %p614_p6, %p611_p5 }
 0x398   :  { %619 = shalt.err (!%p616_p7)
}
 0x399   :  { %s627_s0 = smov 128   ;;  %s628_s30 = smov 8  }
 0x39a   :  { %466 = dma.vmem_to_hbm [thread:$0]  %s461_s21, 768, %s861_s8, [#allocation3], %s627_s0, %s627_s0, %s628_s30  }
 0x39b   :  { %620 = dma.done.wait [#allocation3], 768  }
 0x39c   :  { %621 = vsyncadd [#allocation3], 4294966528 }
 0x39d   :  { %470 = vsyncpa [#allocation3], 1 }

</bundles_post_ra>
